<compile_context>
chip_gen: v6e
topology: v6e:2x2x1
jax: 0.10.0
libtpu: 0.0.40
codegen_flags: <defaults>
</compile_context>

<pallas_src>
import functools
import math

import jax
import jax.numpy as jnp
from jax.experimental import pallas as pl
from jax.experimental.pallas import tpu as pltpu


def _encoder_layer_kernel(
    x_ref,                                   # (S, N, E) f32, batch_first=False layout
    wq_ref, wk_ref, wv_ref, wo_ref,          # (E, E) bf16 each (pre-transposed)
    w1_ref, w2_ref,                          # (E, F), (F, E) bf16 (pre-transposed)
    vecs_ref,                                # (9, E) f32: bq,bk,bv,bo,g1,beta1,b2,g2,beta2
    b1_ref,                                  # (1, F) f32
    o_ref,                                   # (S, N, E) f32
    *, nhead, eps,
):
    S, N, E = x_ref.shape
    dh = E // nhead
    scale = 1.0 / math.sqrt(dh)

    # ---- fold batch into the GEMM M dimension (batch-major rows) ----------
    x3 = x_ref[...]                                              # (S, N, E) f32
    x2 = jnp.concatenate([x3[:, n, :] for n in range(N)], axis=0)  # (N*S, E)
    xb = x2.astype(jnp.bfloat16)

    bq = vecs_ref[0:1, :]
    bk = vecs_ref[1:2, :]
    bv = vecs_ref[2:3, :]
    bo = vecs_ref[3:4, :]
    g1 = vecs_ref[4:5, :]
    be1 = vecs_ref[5:6, :]
    b2 = vecs_ref[6:7, :]
    g2 = vecs_ref[7:8, :]
    be2 = vecs_ref[8:9, :]

    wo = wo_ref[...]                                             # (E, E) bf16

    # ---- QKV projections: one big GEMM each over M = N*S rows -------------
    q = jnp.dot(xb, wq_ref[...], preferred_element_type=jnp.float32) + bq
    k = jnp.dot(xb, wk_ref[...], preferred_element_type=jnp.float32) + bk
    v = jnp.dot(xb, wv_ref[...], preferred_element_type=jnp.float32) + bv

    # ---- multi-head self-attention -----------------------------------------
    # Heads are folded straight into the output projection: each head's
    # context is multiplied by its dh rows of Wo and accumulated into a
    # lane-dense (S, E) buffer -> no concatenate, no masked narrow stores.
    attn_rows = []
    for n in range(N):                       # static loop over batch elements
        r0 = n * S
        qn = q[r0:r0 + S, :]
        kn = k[r0:r0 + S, :]
        vn = v[r0:r0 + S, :]
        acc = jnp.zeros((S, E), jnp.float32)
        for h in range(nhead):               # static loop over heads
            c0 = h * dh
            qh = qn[:, c0:c0 + dh].astype(jnp.bfloat16)
            kh = kn[:, c0:c0 + dh].astype(jnp.bfloat16)
            vh = vn[:, c0:c0 + dh].astype(jnp.bfloat16)
            # q @ k^T without an explicit transpose (contract last dims)
            s = jax.lax.dot_general(
                qh, kh, (((1,), (1,)), ((), ())),
                preferred_element_type=jnp.float32) * scale
            s = s - jnp.max(s, axis=-1, keepdims=True)
            p = jnp.exp(s)
            p = p * pl.reciprocal(jnp.sum(p, axis=-1, keepdims=True), approx=True)
            ctx = jnp.dot(p.astype(jnp.bfloat16), vh,
                          preferred_element_type=jnp.float32)    # (S, dh)
            acc = acc + jnp.dot(ctx.astype(jnp.bfloat16), wo[c0:c0 + dh, :],
                                preferred_element_type=jnp.float32)
        attn_rows.append(acc)
    attn2 = jnp.concatenate(attn_rows, axis=0) + bo              # (N*S, E)

    # ---- residual + layernorm1 (dropout1 == identity) ----------------------
    y = x2 + attn2
    mu = jnp.mean(y, axis=-1, keepdims=True)
    var = jnp.mean((y - mu) ** 2, axis=-1, keepdims=True)
    y = (y - mu) * jax.lax.rsqrt(var + eps) * g1 + be1

    # ---- feed-forward: linear1 -> ReLU -> (dropout) -> linear2 -------------
    yb = y.astype(jnp.bfloat16)
    hdn = jnp.dot(yb, w1_ref[...], preferred_element_type=jnp.float32) + b1_ref[...]
    hdn = jnp.maximum(hdn, 0.0)
    ff = jnp.dot(hdn.astype(jnp.bfloat16), w2_ref[...],
                 preferred_element_type=jnp.float32) + b2

    # ---- residual + layernorm2 (dropout2 == identity) ----------------------
    z = y + ff
    mu2 = jnp.mean(z, axis=-1, keepdims=True)
    var2 = jnp.mean((z - mu2) ** 2, axis=-1, keepdims=True)
    z = (z - mu2) * jax.lax.rsqrt(var2 + eps) * g2 + be2

    # ---- write back in native (S, N, E) layout (no wrapper transpose) ------
    o_ref[...] = jnp.stack([z[n * S:(n + 1) * S, :] for n in range(N)],
                           axis=1).astype(o_ref.dtype)


def transformer_encoder_layer(src, params, *, nhead, eps=1e-5,
                              vmem_limit_bytes=32 * 1024 * 1024):
    """src: (S, N, E) — PyTorch batch_first=False layout.  No boundary transposes."""
    S, N, E = src.shape
    F = params["w1_t"].shape[1]

    # Pack the 9 E-sized bias / LayerNorm vectors into one (9, E) array.
    vecs = jnp.stack(
        [params["bq"], params["bk"], params["bv"], params["bo"],
         params["g1"], params["beta1"], params["b2"],
         params["g2"], params["beta2"]], axis=0).astype(jnp.float32)   # (9, E)
    b1 = params["b1"].reshape(1, F).astype(jnp.float32)

    kernel = functools.partial(_encoder_layer_kernel, nhead=nhead, eps=eps)
    return pl.pallas_call(
        kernel,
        out_shape=jax.ShapeDtypeStruct((S, N, E), src.dtype),
        compiler_params=pltpu.CompilerParams(vmem_limit_bytes=vmem_limit_bytes),
    )(src,
      params["wq_t"], params["wk_t"], params["wv_t"], params["wo_t"],
      params["w1_t"], params["w2_t"], vecs, b1)


def make_params(key, d_model, nhead, dim_feedforward):
    """Deterministic synthetic parameters matching nn.TransformerEncoderLayer shapes.

    Weights are stored pre-transposed (so the kernel computes y = x @ W + b)
    and cast to bf16 for the MXU; biases / LayerNorm params stay f32.
    """
    ks = jax.random.split(key, 8)
    E, F = d_model, dim_feedforward
    sc = 0.05
    wq = jax.random.normal(ks[0], (E, E), jnp.float32) * sc
    wk = jax.random.normal(ks[1], (E, E), jnp.float32) * sc
    wv = jax.random.normal(ks[2], (E, E), jnp.float32) * sc
    wo = jax.random.normal(ks[3], (E, E), jnp.float32) * sc
    w1 = jax.random.normal(ks[4], (F, E), jnp.float32) * sc   # linear1.weight
    w2 = jax.random.normal(ks[5], (E, F), jnp.float32) * sc   # linear2.weight
    bq = jax.random.normal(ks[6], (E,), jnp.float32) * sc
    bv = jax.random.normal(ks[7], (E,), jnp.float32) * sc
    return {
        "wq_t": wq.T.astype(jnp.bfloat16), "wk_t": wk.T.astype(jnp.bfloat16),
        "wv_t": wv.T.astype(jnp.bfloat16), "wo_t": wo.T.astype(jnp.bfloat16),
        "w1_t": w1.T.astype(jnp.bfloat16), "w2_t": w2.T.astype(jnp.bfloat16),
        "bq": bq, "bk": jnp.zeros((E,), jnp.float32), "bv": bv,
        "bo": jnp.zeros((E,), jnp.float32),
        "b1": jnp.zeros((F,), jnp.float32), "b2": jnp.zeros((E,), jnp.float32),
        "g1": jnp.ones((E,), jnp.float32), "beta1": jnp.zeros((E,), jnp.float32),
        "g2": jnp.ones((E,), jnp.float32), "beta2": jnp.zeros((E,), jnp.float32),
    }


def _reference(src, p, *, nhead, eps=1e-5):
    """Pure-JAX f32 reference of the same forward (eval-mode dropout)."""
    S, N, E = src.shape
    dh = E // nhead
    f32 = lambda a: a.astype(jnp.float32)
    x = jnp.transpose(src, (1, 0, 2))          # (N, S, E)
    q = x @ f32(p["wq_t"]) + p["bq"]
    k = x @ f32(p["wk_t"]) + p["bk"]
    v = x @ f32(p["wv_t"]) + p["bv"]
    qh = q.reshape(N, S, nhead, dh).transpose(0, 2, 1, 3)
    kh = k.reshape(N, S, nhead, dh).transpose(0, 2, 1, 3)
    vh = v.reshape(N, S, nhead, dh).transpose(0, 2, 1, 3)
    s = jnp.einsum("nhqd,nhkd->nhqk", qh, kh) / math.sqrt(dh)
    a = jax.nn.softmax(s, axis=-1)
    ctx = jnp.einsum("nhqk,nhkd->nhqd", a, vh).transpose(0, 2, 1, 3).reshape(N, S, E)
    attn = ctx @ f32(p["wo_t"]) + p["bo"]

    def ln(t, g, b):
        mu = t.mean(-1, keepdims=True)
        var = ((t - mu) ** 2).mean(-1, keepdims=True)
        return (t - mu) * jax.lax.rsqrt(var + eps) * g + b

    y = ln(x + attn, p["g1"], p["beta1"])
    ff = jnp.maximum(y @ f32(p["w1_t"]) + p["b1"], 0.0) @ f32(p["w2_t"]) + p["b2"]
    z = ln(y + ff, p["g2"], p["beta2"])
    return jnp.transpose(z, (1, 0, 2))


if __name__ == "__main__":
    d_model, nhead, dim_feedforward = 32, 4, 64
    seq, batch = 8, 2

    key = jax.random.PRNGKey(0)
    k_src, k_par = jax.random.split(key)
    src = jax.random.normal(k_src, (seq, batch, d_model), jnp.float32)
    params = make_params(k_par, d_model, nhead, dim_feedforward)

    out = transformer_encoder_layer(src, params, nhead=nhead)
    out = jax.block_until_ready(out)

    ref = _reference(src, params, nhead=nhead)
    assert out.shape == (seq, batch, d_model)
    max_err = float(jnp.max(jnp.abs(out - ref)))
    # bf16 matmul operands + approx softmax reciprocal vs f32 reference
    assert jnp.allclose(out, ref, atol=2e-2, rtol=2e-2), \
        f"mismatch vs JAX reference (max abs err {max_err})"

    print("KERNEL_OK")
</pallas_src>

<mosaic_0001>
module attributes {stable_mosaic.version = 11 : i64} {
  func.func @_encoder_layer_kernel(%arg0: memref<8x2x32xf32, #tpu.memory_space<vmem>>, %arg1: memref<32x32xbf16, #tpu.memory_space<vmem>>, %arg2: memref<32x32xbf16, #tpu.memory_space<vmem>>, %arg3: memref<32x32xbf16, #tpu.memory_space<vmem>>, %arg4: memref<32x32xbf16, #tpu.memory_space<vmem>>, %arg5: memref<32x64xbf16, #tpu.memory_space<vmem>>, %arg6: memref<64x32xbf16, #tpu.memory_space<vmem>>, %arg7: memref<9x32xf32, #tpu.memory_space<vmem>>, %arg8: memref<1x64xf32, #tpu.memory_space<vmem>>, %arg9: memref<8x2x32xf32, #tpu.memory_space<vmem>>) attributes {dimension_semantics = [], scalar_prefetch = 0 : i64, scratch_operands = 0 : i64, tpu.core_type = #tpu.core_type<tc>} {
    %c0 = arith.constant 0 : index
    %c0_0 = arith.constant 0 : index
    %c0_1 = arith.constant 0 : index
    %0 = vector.load %arg0[%c0, %c0_0, %c0_1] : memref<8x2x32xf32, #tpu.memory_space<vmem>>, vector<8x2x32xf32>
    %1 = vector.extract_strided_slice %0 {offsets = [0, 0, 0], sizes = [8, 1, 32], strides = [1, 1, 1]} : vector<8x2x32xf32> to vector<8x1x32xf32>
    %2 = vector.shape_cast %1 : vector<8x1x32xf32> to vector<8x32xf32>
    %3 = vector.extract_strided_slice %0 {offsets = [0, 1, 0], sizes = [8, 1, 32], strides = [1, 1, 1]} : vector<8x2x32xf32> to vector<8x1x32xf32>
    %4 = vector.shape_cast %3 : vector<8x1x32xf32> to vector<8x32xf32>
    %5 = tpu.concatenate %2, %4 in 0 : vector<8x32xf32>, vector<8x32xf32> -> vector<16x32xf32>
    %6 = arith.truncf %5 : vector<16x32xf32> to vector<16x32xbf16>
    %c0_2 = arith.constant 0 : index
    %c0_3 = arith.constant 0 : index
    %7 = vector.load %arg7[%c0_2, %c0_3] : memref<9x32xf32, #tpu.memory_space<vmem>>, vector<1x32xf32>
    %c1 = arith.constant 1 : index
    %c0_4 = arith.constant 0 : index
    %8 = vector.load %arg7[%c1, %c0_4] : memref<9x32xf32, #tpu.memory_space<vmem>>, vector<1x32xf32>
    %c2 = arith.constant 2 : index
    %c0_5 = arith.constant 0 : index
    %9 = vector.load %arg7[%c2, %c0_5] : memref<9x32xf32, #tpu.memory_space<vmem>>, vector<1x32xf32>
    %c3 = arith.constant 3 : index
    %c0_6 = arith.constant 0 : index
    %10 = vector.load %arg7[%c3, %c0_6] : memref<9x32xf32, #tpu.memory_space<vmem>>, vector<1x32xf32>
    %c4 = arith.constant 4 : index
    %c0_7 = arith.constant 0 : index
    %11 = vector.load %arg7[%c4, %c0_7] : memref<9x32xf32, #tpu.memory_space<vmem>>, vector<1x32xf32>
    %c5 = arith.constant 5 : index
    %c0_8 = arith.constant 0 : index
    %12 = vector.load %arg7[%c5, %c0_8] : memref<9x32xf32, #tpu.memory_space<vmem>>, vector<1x32xf32>
    %c6 = arith.constant 6 : index
    %c0_9 = arith.constant 0 : index
    %13 = vector.load %arg7[%c6, %c0_9] : memref<9x32xf32, #tpu.memory_space<vmem>>, vector<1x32xf32>
    %c7 = arith.constant 7 : index
    %c0_10 = arith.constant 0 : index
    %14 = vector.load %arg7[%c7, %c0_10] : memref<9x32xf32, #tpu.memory_space<vmem>>, vector<1x32xf32>
    %c8 = arith.constant 8 : index
    %c0_11 = arith.constant 0 : index
    %15 = vector.load %arg7[%c8, %c0_11] : memref<9x32xf32, #tpu.memory_space<vmem>>, vector<1x32xf32>
    %c0_12 = arith.constant 0 : index
    %c0_13 = arith.constant 0 : index
    %16 = vector.load %arg4[%c0_12, %c0_13] : memref<32x32xbf16, #tpu.memory_space<vmem>>, vector<32x32xbf16>
    %c0_14 = arith.constant 0 : index
    %c0_15 = arith.constant 0 : index
    %17 = vector.load %arg1[%c0_14, %c0_15] : memref<32x32xbf16, #tpu.memory_space<vmem>>, vector<32x32xbf16>
    %cst = arith.constant dense<0.000000e+00> : vector<16x32xf32>
    %18 = tpu.matmul %6, %17, %cst {dimension_numbers = #tpu.dot_dimension_numbers<[1], [0], [0], [1], [0, 0, 1, 1], [], []>} : vector<16x32xbf16>, vector<32x32xbf16>, vector<16x32xf32> -> vector<16x32xf32>
    %19 = vector.broadcast %7 : vector<1x32xf32> to vector<16x32xf32>
    %20 = arith.addf %18, %19 : vector<16x32xf32>
    %c0_16 = arith.constant 0 : index
    %c0_17 = arith.constant 0 : index
    %21 = vector.load %arg2[%c0_16, %c0_17] : memref<32x32xbf16, #tpu.memory_space<vmem>>, vector<32x32xbf16>
    %cst_18 = arith.constant dense<0.000000e+00> : vector<16x32xf32>
    %22 = tpu.matmul %6, %21, %cst_18 {dimension_numbers = #tpu.dot_dimension_numbers<[1], [0], [0], [1], [0, 0, 1, 1], [], []>} : vector<16x32xbf16>, vector<32x32xbf16>, vector<16x32xf32> -> vector<16x32xf32>
    %23 = vector.broadcast %8 : vector<1x32xf32> to vector<16x32xf32>
    %24 = arith.addf %22, %23 : vector<16x32xf32>
    %c0_19 = arith.constant 0 : index
    %c0_20 = arith.constant 0 : index
    %25 = vector.load %arg3[%c0_19, %c0_20] : memref<32x32xbf16, #tpu.memory_space<vmem>>, vector<32x32xbf16>
    %cst_21 = arith.constant dense<0.000000e+00> : vector<16x32xf32>
    %26 = tpu.matmul %6, %25, %cst_21 {dimension_numbers = #tpu.dot_dimension_numbers<[1], [0], [0], [1], [0, 0, 1, 1], [], []>} : vector<16x32xbf16>, vector<32x32xbf16>, vector<16x32xf32> -> vector<16x32xf32>
    %27 = vector.broadcast %9 : vector<1x32xf32> to vector<16x32xf32>
    %28 = arith.addf %26, %27 : vector<16x32xf32>
    %29 = vector.extract_strided_slice %20 {offsets = [0, 0], sizes = [8, 32], strides = [1, 1]} : vector<16x32xf32> to vector<8x32xf32>
    %30 = vector.extract_strided_slice %24 {offsets = [0, 0], sizes = [8, 32], strides = [1, 1]} : vector<16x32xf32> to vector<8x32xf32>
    %31 = vector.extract_strided_slice %28 {offsets = [0, 0], sizes = [8, 32], strides = [1, 1]} : vector<16x32xf32> to vector<8x32xf32>
    %cst_22 = arith.constant 0.000000e+00 : f32
    %32 = vector.broadcast %cst_22 : f32 to vector<8x32xf32>
    %33 = vector.extract_strided_slice %29 {offsets = [0, 0], sizes = [8, 8], strides = [1, 1]} : vector<8x32xf32> to vector<8x8xf32>
    %34 = arith.truncf %33 : vector<8x8xf32> to vector<8x8xbf16>
    %35 = vector.extract_strided_slice %30 {offsets = [0, 0], sizes = [8, 8], strides = [1, 1]} : vector<8x32xf32> to vector<8x8xf32>
    %36 = arith.truncf %35 : vector<8x8xf32> to vector<8x8xbf16>
    %37 = vector.extract_strided_slice %31 {offsets = [0, 0], sizes = [8, 8], strides = [1, 1]} : vector<8x32xf32> to vector<8x8xf32>
    %38 = arith.truncf %37 : vector<8x8xf32> to vector<8x8xbf16>
    %cst_23 = arith.constant dense<0.000000e+00> : vector<8x8xf32>
    %39 = tpu.matmul %34, %36, %cst_23 {dimension_numbers = #tpu.dot_dimension_numbers<[1], [1], [0], [0], [0, 0, 1, 0], [], []>} : vector<8x8xbf16>, vector<8x8xbf16>, vector<8x8xf32> -> vector<8x8xf32>
    %cst_24 = arith.constant 0.353553385 : f32
    %40 = vector.broadcast %cst_24 : f32 to vector<8x8xf32>
    %41 = arith.mulf %39, %40 : vector<8x8xf32>
    %cst_25 = arith.constant dense<0xFF800000> : vector<8xf32>
    %42 = vector.multi_reduction <maximumf>, %41, %cst_25 [1] : vector<8x8xf32> to vector<8xf32>
    %43 = vector.shape_cast %42 : vector<8xf32> to vector<8x1xf32>
    %44 = vector.broadcast %43 : vector<8x1xf32> to vector<8x8xf32>
    %45 = arith.subf %41, %44 : vector<8x8xf32>
    %46 = math.exp %45 : vector<8x8xf32>
    %cst_26 = arith.constant dense<0.000000e+00> : vector<8xf32>
    %47 = vector.multi_reduction <add>, %46, %cst_26 [1] : vector<8x8xf32> to vector<8xf32>
    %48 = vector.shape_cast %47 : vector<8xf32> to vector<8x1xf32>
    %49 = tpu.reciprocal %48 {approx = true} : vector<8x1xf32> -> vector<8x1xf32>
    %50 = vector.broadcast %49 : vector<8x1xf32> to vector<8x8xf32>
    %51 = arith.mulf %46, %50 : vector<8x8xf32>
    %52 = arith.truncf %51 : vector<8x8xf32> to vector<8x8xbf16>
    %cst_27 = arith.constant dense<0.000000e+00> : vector<8x8xf32>
    %53 = tpu.matmul %52, %38, %cst_27 {dimension_numbers = #tpu.dot_dimension_numbers<[1], [0], [0], [1], [0, 0, 1, 1], [], []>} : vector<8x8xbf16>, vector<8x8xbf16>, vector<8x8xf32> -> vector<8x8xf32>
    %54 = arith.truncf %53 : vector<8x8xf32> to vector<8x8xbf16>
    %55 = vector.extract_strided_slice %16 {offsets = [0, 0], sizes = [8, 32], strides = [1, 1]} : vector<32x32xbf16> to vector<8x32xbf16>
    %cst_28 = arith.constant dense<0.000000e+00> : vector<8x32xf32>
    %56 = tpu.matmul %54, %55, %cst_28 {dimension_numbers = #tpu.dot_dimension_numbers<[1], [0], [0], [1], [0, 0, 1, 1], [], []>} : vector<8x8xbf16>, vector<8x32xbf16>, vector<8x32xf32> -> vector<8x32xf32>
    %57 = arith.addf %32, %56 : vector<8x32xf32>
    %58 = vector.extract_strided_slice %29 {offsets = [0, 8], sizes = [8, 8], strides = [1, 1]} : vector<8x32xf32> to vector<8x8xf32>
    %59 = arith.truncf %58 : vector<8x8xf32> to vector<8x8xbf16>
    %60 = vector.extract_strided_slice %30 {offsets = [0, 8], sizes = [8, 8], strides = [1, 1]} : vector<8x32xf32> to vector<8x8xf32>
    %61 = arith.truncf %60 : vector<8x8xf32> to vector<8x8xbf16>
    %62 = vector.extract_strided_slice %31 {offsets = [0, 8], sizes = [8, 8], strides = [1, 1]} : vector<8x32xf32> to vector<8x8xf32>
    %63 = arith.truncf %62 : vector<8x8xf32> to vector<8x8xbf16>
    %cst_29 = arith.constant dense<0.000000e+00> : vector<8x8xf32>
    %64 = tpu.matmul %59, %61, %cst_29 {dimension_numbers = #tpu.dot_dimension_numbers<[1], [1], [0], [0], [0, 0, 1, 0], [], []>} : vector<8x8xbf16>, vector<8x8xbf16>, vector<8x8xf32> -> vector<8x8xf32>
    %cst_30 = arith.constant 0.353553385 : f32
    %65 = vector.broadcast %cst_30 : f32 to vector<8x8xf32>
    %66 = arith.mulf %64, %65 : vector<8x8xf32>
    %cst_31 = arith.constant dense<0xFF800000> : vector<8xf32>
    %67 = vector.multi_reduction <maximumf>, %66, %cst_31 [1] : vector<8x8xf32> to vector<8xf32>
    %68 = vector.shape_cast %67 : vector<8xf32> to vector<8x1xf32>
    %69 = vector.broadcast %68 : vector<8x1xf32> to vector<8x8xf32>
    %70 = arith.subf %66, %69 : vector<8x8xf32>
    %71 = math.exp %70 : vector<8x8xf32>
    %cst_32 = arith.constant dense<0.000000e+00> : vector<8xf32>
    %72 = vector.multi_reduction <add>, %71, %cst_32 [1] : vector<8x8xf32> to vector<8xf32>
    %73 = vector.shape_cast %72 : vector<8xf32> to vector<8x1xf32>
    %74 = tpu.reciprocal %73 {approx = true} : vector<8x1xf32> -> vector<8x1xf32>
    %75 = vector.broadcast %74 : vector<8x1xf32> to vector<8x8xf32>
    %76 = arith.mulf %71, %75 : vector<8x8xf32>
    %77 = arith.truncf %76 : vector<8x8xf32> to vector<8x8xbf16>
    %cst_33 = arith.constant dense<0.000000e+00> : vector<8x8xf32>
    %78 = tpu.matmul %77, %63, %cst_33 {dimension_numbers = #tpu.dot_dimension_numbers<[1], [0], [0], [1], [0, 0, 1, 1], [], []>} : vector<8x8xbf16>, vector<8x8xbf16>, vector<8x8xf32> -> vector<8x8xf32>
    %79 = arith.truncf %78 : vector<8x8xf32> to vector<8x8xbf16>
    %80 = vector.extract_strided_slice %16 {offsets = [8, 0], sizes = [8, 32], strides = [1, 1]} : vector<32x32xbf16> to vector<8x32xbf16>
    %cst_34 = arith.constant dense<0.000000e+00> : vector<8x32xf32>
    %81 = tpu.matmul %79, %80, %cst_34 {dimension_numbers = #tpu.dot_dimension_numbers<[1], [0], [0], [1], [0, 0, 1, 1], [], []>} : vector<8x8xbf16>, vector<8x32xbf16>, vector<8x32xf32> -> vector<8x32xf32>
    %82 = arith.addf %57, %81 : vector<8x32xf32>
    %83 = vector.extract_strided_slice %29 {offsets = [0, 16], sizes = [8, 8], strides = [1, 1]} : vector<8x32xf32> to vector<8x8xf32>
    %84 = arith.truncf %83 : vector<8x8xf32> to vector<8x8xbf16>
    %85 = vector.extract_strided_slice %30 {offsets = [0, 16], sizes = [8, 8], strides = [1, 1]} : vector<8x32xf32> to vector<8x8xf32>
    %86 = arith.truncf %85 : vector<8x8xf32> to vector<8x8xbf16>
    %87 = vector.extract_strided_slice %31 {offsets = [0, 16], sizes = [8, 8], strides = [1, 1]} : vector<8x32xf32> to vector<8x8xf32>
    %88 = arith.truncf %87 : vector<8x8xf32> to vector<8x8xbf16>
    %cst_35 = arith.constant dense<0.000000e+00> : vector<8x8xf32>
    %89 = tpu.matmul %84, %86, %cst_35 {dimension_numbers = #tpu.dot_dimension_numbers<[1], [1], [0], [0], [0, 0, 1, 0], [], []>} : vector<8x8xbf16>, vector<8x8xbf16>, vector<8x8xf32> -> vector<8x8xf32>
    %cst_36 = arith.constant 0.353553385 : f32
    %90 = vector.broadcast %cst_36 : f32 to vector<8x8xf32>
    %91 = arith.mulf %89, %90 : vector<8x8xf32>
    %cst_37 = arith.constant dense<0xFF800000> : vector<8xf32>
    %92 = vector.multi_reduction <maximumf>, %91, %cst_37 [1] : vector<8x8xf32> to vector<8xf32>
    %93 = vector.shape_cast %92 : vector<8xf32> to vector<8x1xf32>
    %94 = vector.broadcast %93 : vector<8x1xf32> to vector<8x8xf32>
    %95 = arith.subf %91, %94 : vector<8x8xf32>
    %96 = math.exp %95 : vector<8x8xf32>
    %cst_38 = arith.constant dense<0.000000e+00> : vector<8xf32>
    %97 = vector.multi_reduction <add>, %96, %cst_38 [1] : vector<8x8xf32> to vector<8xf32>
    %98 = vector.shape_cast %97 : vector<8xf32> to vector<8x1xf32>
    %99 = tpu.reciprocal %98 {approx = true} : vector<8x1xf32> -> vector<8x1xf32>
    %100 = vector.broadcast %99 : vector<8x1xf32> to vector<8x8xf32>
    %101 = arith.mulf %96, %100 : vector<8x8xf32>
    %102 = arith.truncf %101 : vector<8x8xf32> to vector<8x8xbf16>
    %cst_39 = arith.constant dense<0.000000e+00> : vector<8x8xf32>
    %103 = tpu.matmul %102, %88, %cst_39 {dimension_numbers = #tpu.dot_dimension_numbers<[1], [0], [0], [1], [0, 0, 1, 1], [], []>} : vector<8x8xbf16>, vector<8x8xbf16>, vector<8x8xf32> -> vector<8x8xf32>
    %104 = arith.truncf %103 : vector<8x8xf32> to vector<8x8xbf16>
    %105 = vector.extract_strided_slice %16 {offsets = [16, 0], sizes = [8, 32], strides = [1, 1]} : vector<32x32xbf16> to vector<8x32xbf16>
    %cst_40 = arith.constant dense<0.000000e+00> : vector<8x32xf32>
    %106 = tpu.matmul %104, %105, %cst_40 {dimension_numbers = #tpu.dot_dimension_numbers<[1], [0], [0], [1], [0, 0, 1, 1], [], []>} : vector<8x8xbf16>, vector<8x32xbf16>, vector<8x32xf32> -> vector<8x32xf32>
    %107 = arith.addf %82, %106 : vector<8x32xf32>
    %108 = vector.extract_strided_slice %29 {offsets = [0, 24], sizes = [8, 8], strides = [1, 1]} : vector<8x32xf32> to vector<8x8xf32>
    %109 = arith.truncf %108 : vector<8x8xf32> to vector<8x8xbf16>
    %110 = vector.extract_strided_slice %30 {offsets = [0, 24], sizes = [8, 8], strides = [1, 1]} : vector<8x32xf32> to vector<8x8xf32>
    %111 = arith.truncf %110 : vector<8x8xf32> to vector<8x8xbf16>
    %112 = vector.extract_strided_slice %31 {offsets = [0, 24], sizes = [8, 8], strides = [1, 1]} : vector<8x32xf32> to vector<8x8xf32>
    %113 = arith.truncf %112 : vector<8x8xf32> to vector<8x8xbf16>
    %cst_41 = arith.constant dense<0.000000e+00> : vector<8x8xf32>
    %114 = tpu.matmul %109, %111, %cst_41 {dimension_numbers = #tpu.dot_dimension_numbers<[1], [1], [0], [0], [0, 0, 1, 0], [], []>} : vector<8x8xbf16>, vector<8x8xbf16>, vector<8x8xf32> -> vector<8x8xf32>
    %cst_42 = arith.constant 0.353553385 : f32
    %115 = vector.broadcast %cst_42 : f32 to vector<8x8xf32>
    %116 = arith.mulf %114, %115 : vector<8x8xf32>
    %cst_43 = arith.constant dense<0xFF800000> : vector<8xf32>
    %117 = vector.multi_reduction <maximumf>, %116, %cst_43 [1] : vector<8x8xf32> to vector<8xf32>
    %118 = vector.shape_cast %117 : vector<8xf32> to vector<8x1xf32>
    %119 = vector.broadcast %118 : vector<8x1xf32> to vector<8x8xf32>
    %120 = arith.subf %116, %119 : vector<8x8xf32>
    %121 = math.exp %120 : vector<8x8xf32>
    %cst_44 = arith.constant dense<0.000000e+00> : vector<8xf32>
    %122 = vector.multi_reduction <add>, %121, %cst_44 [1] : vector<8x8xf32> to vector<8xf32>
    %123 = vector.shape_cast %122 : vector<8xf32> to vector<8x1xf32>
    %124 = tpu.reciprocal %123 {approx = true} : vector<8x1xf32> -> vector<8x1xf32>
    %125 = vector.broadcast %124 : vector<8x1xf32> to vector<8x8xf32>
    %126 = arith.mulf %121, %125 : vector<8x8xf32>
    %127 = arith.truncf %126 : vector<8x8xf32> to vector<8x8xbf16>
    %cst_45 = arith.constant dense<0.000000e+00> : vector<8x8xf32>
    %128 = tpu.matmul %127, %113, %cst_45 {dimension_numbers = #tpu.dot_dimension_numbers<[1], [0], [0], [1], [0, 0, 1, 1], [], []>} : vector<8x8xbf16>, vector<8x8xbf16>, vector<8x8xf32> -> vector<8x8xf32>
    %129 = arith.truncf %128 : vector<8x8xf32> to vector<8x8xbf16>
    %130 = vector.extract_strided_slice %16 {offsets = [24, 0], sizes = [8, 32], strides = [1, 1]} : vector<32x32xbf16> to vector<8x32xbf16>
    %cst_46 = arith.constant dense<0.000000e+00> : vector<8x32xf32>
    %131 = tpu.matmul %129, %130, %cst_46 {dimension_numbers = #tpu.dot_dimension_numbers<[1], [0], [0], [1], [0, 0, 1, 1], [], []>} : vector<8x8xbf16>, vector<8x32xbf16>, vector<8x32xf32> -> vector<8x32xf32>
    %132 = arith.addf %107, %131 : vector<8x32xf32>
    %133 = vector.extract_strided_slice %20 {offsets = [8, 0], sizes = [8, 32], strides = [1, 1]} : vector<16x32xf32> to vector<8x32xf32>
    %134 = vector.extract_strided_slice %24 {offsets = [8, 0], sizes = [8, 32], strides = [1, 1]} : vector<16x32xf32> to vector<8x32xf32>
    %135 = vector.extract_strided_slice %28 {offsets = [8, 0], sizes = [8, 32], strides = [1, 1]} : vector<16x32xf32> to vector<8x32xf32>
    %cst_47 = arith.constant 0.000000e+00 : f32
    %136 = vector.broadcast %cst_47 : f32 to vector<8x32xf32>
    %137 = vector.extract_strided_slice %133 {offsets = [0, 0], sizes = [8, 8], strides = [1, 1]} : vector<8x32xf32> to vector<8x8xf32>
    %138 = arith.truncf %137 : vector<8x8xf32> to vector<8x8xbf16>
    %139 = vector.extract_strided_slice %134 {offsets = [0, 0], sizes = [8, 8], strides = [1, 1]} : vector<8x32xf32> to vector<8x8xf32>
    %140 = arith.truncf %139 : vector<8x8xf32> to vector<8x8xbf16>
    %141 = vector.extract_strided_slice %135 {offsets = [0, 0], sizes = [8, 8], strides = [1, 1]} : vector<8x32xf32> to vector<8x8xf32>
    %142 = arith.truncf %141 : vector<8x8xf32> to vector<8x8xbf16>
    %cst_48 = arith.constant dense<0.000000e+00> : vector<8x8xf32>
    %143 = tpu.matmul %138, %140, %cst_48 {dimension_numbers = #tpu.dot_dimension_numbers<[1], [1], [0], [0], [0, 0, 1, 0], [], []>} : vector<8x8xbf16>, vector<8x8xbf16>, vector<8x8xf32> -> vector<8x8xf32>
    %cst_49 = arith.constant 0.353553385 : f32
    %144 = vector.broadcast %cst_49 : f32 to vector<8x8xf32>
    %145 = arith.mulf %143, %144 : vector<8x8xf32>
    %cst_50 = arith.constant dense<0xFF800000> : vector<8xf32>
    %146 = vector.multi_reduction <maximumf>, %145, %cst_50 [1] : vector<8x8xf32> to vector<8xf32>
    %147 = vector.shape_cast %146 : vector<8xf32> to vector<8x1xf32>
    %148 = vector.broadcast %147 : vector<8x1xf32> to vector<8x8xf32>
    %149 = arith.subf %145, %148 : vector<8x8xf32>
    %150 = math.exp %149 : vector<8x8xf32>
    %cst_51 = arith.constant dense<0.000000e+00> : vector<8xf32>
    %151 = vector.multi_reduction <add>, %150, %cst_51 [1] : vector<8x8xf32> to vector<8xf32>
    %152 = vector.shape_cast %151 : vector<8xf32> to vector<8x1xf32>
    %153 = tpu.reciprocal %152 {approx = true} : vector<8x1xf32> -> vector<8x1xf32>
    %154 = vector.broadcast %153 : vector<8x1xf32> to vector<8x8xf32>
    %155 = arith.mulf %150, %154 : vector<8x8xf32>
    %156 = arith.truncf %155 : vector<8x8xf32> to vector<8x8xbf16>
    %cst_52 = arith.constant dense<0.000000e+00> : vector<8x8xf32>
    %157 = tpu.matmul %156, %142, %cst_52 {dimension_numbers = #tpu.dot_dimension_numbers<[1], [0], [0], [1], [0, 0, 1, 1], [], []>} : vector<8x8xbf16>, vector<8x8xbf16>, vector<8x8xf32> -> vector<8x8xf32>
    %158 = arith.truncf %157 : vector<8x8xf32> to vector<8x8xbf16>
    %159 = vector.extract_strided_slice %16 {offsets = [0, 0], sizes = [8, 32], strides = [1, 1]} : vector<32x32xbf16> to vector<8x32xbf16>
    %cst_53 = arith.constant dense<0.000000e+00> : vector<8x32xf32>
    %160 = tpu.matmul %158, %159, %cst_53 {dimension_numbers = #tpu.dot_dimension_numbers<[1], [0], [0], [1], [0, 0, 1, 1], [], []>} : vector<8x8xbf16>, vector<8x32xbf16>, vector<8x32xf32> -> vector<8x32xf32>
    %161 = arith.addf %136, %160 : vector<8x32xf32>
    %162 = vector.extract_strided_slice %133 {offsets = [0, 8], sizes = [8, 8], strides = [1, 1]} : vector<8x32xf32> to vector<8x8xf32>
    %163 = arith.truncf %162 : vector<8x8xf32> to vector<8x8xbf16>
    %164 = vector.extract_strided_slice %134 {offsets = [0, 8], sizes = [8, 8], strides = [1, 1]} : vector<8x32xf32> to vector<8x8xf32>
    %165 = arith.truncf %164 : vector<8x8xf32> to vector<8x8xbf16>
    %166 = vector.extract_strided_slice %135 {offsets = [0, 8], sizes = [8, 8], strides = [1, 1]} : vector<8x32xf32> to vector<8x8xf32>
    %167 = arith.truncf %166 : vector<8x8xf32> to vector<8x8xbf16>
    %cst_54 = arith.constant dense<0.000000e+00> : vector<8x8xf32>
    %168 = tpu.matmul %163, %165, %cst_54 {dimension_numbers = #tpu.dot_dimension_numbers<[1], [1], [0], [0], [0, 0, 1, 0], [], []>} : vector<8x8xbf16>, vector<8x8xbf16>, vector<8x8xf32> -> vector<8x8xf32>
    %cst_55 = arith.constant 0.353553385 : f32
    %169 = vector.broadcast %cst_55 : f32 to vector<8x8xf32>
    %170 = arith.mulf %168, %169 : vector<8x8xf32>
    %cst_56 = arith.constant dense<0xFF800000> : vector<8xf32>
    %171 = vector.multi_reduction <maximumf>, %170, %cst_56 [1] : vector<8x8xf32> to vector<8xf32>
    %172 = vector.shape_cast %171 : vector<8xf32> to vector<8x1xf32>
    %173 = vector.broadcast %172 : vector<8x1xf32> to vector<8x8xf32>
    %174 = arith.subf %170, %173 : vector<8x8xf32>
    %175 = math.exp %174 : vector<8x8xf32>
    %cst_57 = arith.constant dense<0.000000e+00> : vector<8xf32>
    %176 = vector.multi_reduction <add>, %175, %cst_57 [1] : vector<8x8xf32> to vector<8xf32>
    %177 = vector.shape_cast %176 : vector<8xf32> to vector<8x1xf32>
    %178 = tpu.reciprocal %177 {approx = true} : vector<8x1xf32> -> vector<8x1xf32>
    %179 = vector.broadcast %178 : vector<8x1xf32> to vector<8x8xf32>
    %180 = arith.mulf %175, %179 : vector<8x8xf32>
    %181 = arith.truncf %180 : vector<8x8xf32> to vector<8x8xbf16>
    %cst_58 = arith.constant dense<0.000000e+00> : vector<8x8xf32>
    %182 = tpu.matmul %181, %167, %cst_58 {dimension_numbers = #tpu.dot_dimension_numbers<[1], [0], [0], [1], [0, 0, 1, 1], [], []>} : vector<8x8xbf16>, vector<8x8xbf16>, vector<8x8xf32> -> vector<8x8xf32>
    %183 = arith.truncf %182 : vector<8x8xf32> to vector<8x8xbf16>
    %184 = vector.extract_strided_slice %16 {offsets = [8, 0], sizes = [8, 32], strides = [1, 1]} : vector<32x32xbf16> to vector<8x32xbf16>
    %cst_59 = arith.constant dense<0.000000e+00> : vector<8x32xf32>
    %185 = tpu.matmul %183, %184, %cst_59 {dimension_numbers = #tpu.dot_dimension_numbers<[1], [0], [0], [1], [0, 0, 1, 1], [], []>} : vector<8x8xbf16>, vector<8x32xbf16>, vector<8x32xf32> -> vector<8x32xf32>
    %186 = arith.addf %161, %185 : vector<8x32xf32>
    %187 = vector.extract_strided_slice %133 {offsets = [0, 16], sizes = [8, 8], strides = [1, 1]} : vector<8x32xf32> to vector<8x8xf32>
    %188 = arith.truncf %187 : vector<8x8xf32> to vector<8x8xbf16>
    %189 = vector.extract_strided_slice %134 {offsets = [0, 16], sizes = [8, 8], strides = [1, 1]} : vector<8x32xf32> to vector<8x8xf32>
    %190 = arith.truncf %189 : vector<8x8xf32> to vector<8x8xbf16>
    %191 = vector.extract_strided_slice %135 {offsets = [0, 16], sizes = [8, 8], strides = [1, 1]} : vector<8x32xf32> to vector<8x8xf32>
    %192 = arith.truncf %191 : vector<8x8xf32> to vector<8x8xbf16>
    %cst_60 = arith.constant dense<0.000000e+00> : vector<8x8xf32>
    %193 = tpu.matmul %188, %190, %cst_60 {dimension_numbers = #tpu.dot_dimension_numbers<[1], [1], [0], [0], [0, 0, 1, 0], [], []>} : vector<8x8xbf16>, vector<8x8xbf16>, vector<8x8xf32> -> vector<8x8xf32>
    %cst_61 = arith.constant 0.353553385 : f32
    %194 = vector.broadcast %cst_61 : f32 to vector<8x8xf32>
    %195 = arith.mulf %193, %194 : vector<8x8xf32>
    %cst_62 = arith.constant dense<0xFF800000> : vector<8xf32>
    %196 = vector.multi_reduction <maximumf>, %195, %cst_62 [1] : vector<8x8xf32> to vector<8xf32>
    %197 = vector.shape_cast %196 : vector<8xf32> to vector<8x1xf32>
    %198 = vector.broadcast %197 : vector<8x1xf32> to vector<8x8xf32>
    %199 = arith.subf %195, %198 : vector<8x8xf32>
    %200 = math.exp %199 : vector<8x8xf32>
    %cst_63 = arith.constant dense<0.000000e+00> : vector<8xf32>
    %201 = vector.multi_reduction <add>, %200, %cst_63 [1] : vector<8x8xf32> to vector<8xf32>
    %202 = vector.shape_cast %201 : vector<8xf32> to vector<8x1xf32>
    %203 = tpu.reciprocal %202 {approx = true} : vector<8x1xf32> -> vector<8x1xf32>
    %204 = vector.broadcast %203 : vector<8x1xf32> to vector<8x8xf32>
    %205 = arith.mulf %200, %204 : vector<8x8xf32>
    %206 = arith.truncf %205 : vector<8x8xf32> to vector<8x8xbf16>
    %cst_64 = arith.constant dense<0.000000e+00> : vector<8x8xf32>
    %207 = tpu.matmul %206, %192, %cst_64 {dimension_numbers = #tpu.dot_dimension_numbers<[1], [0], [0], [1], [0, 0, 1, 1], [], []>} : vector<8x8xbf16>, vector<8x8xbf16>, vector<8x8xf32> -> vector<8x8xf32>
    %208 = arith.truncf %207 : vector<8x8xf32> to vector<8x8xbf16>
    %209 = vector.extract_strided_slice %16 {offsets = [16, 0], sizes = [8, 32], strides = [1, 1]} : vector<32x32xbf16> to vector<8x32xbf16>
    %cst_65 = arith.constant dense<0.000000e+00> : vector<8x32xf32>
    %210 = tpu.matmul %208, %209, %cst_65 {dimension_numbers = #tpu.dot_dimension_numbers<[1], [0], [0], [1], [0, 0, 1, 1], [], []>} : vector<8x8xbf16>, vector<8x32xbf16>, vector<8x32xf32> -> vector<8x32xf32>
    %211 = arith.addf %186, %210 : vector<8x32xf32>
    %212 = vector.extract_strided_slice %133 {offsets = [0, 24], sizes = [8, 8], strides = [1, 1]} : vector<8x32xf32> to vector<8x8xf32>
    %213 = arith.truncf %212 : vector<8x8xf32> to vector<8x8xbf16>
    %214 = vector.extract_strided_slice %134 {offsets = [0, 24], sizes = [8, 8], strides = [1, 1]} : vector<8x32xf32> to vector<8x8xf32>
    %215 = arith.truncf %214 : vector<8x8xf32> to vector<8x8xbf16>
    %216 = vector.extract_strided_slice %135 {offsets = [0, 24], sizes = [8, 8], strides = [1, 1]} : vector<8x32xf32> to vector<8x8xf32>
    %217 = arith.truncf %216 : vector<8x8xf32> to vector<8x8xbf16>
    %cst_66 = arith.constant dense<0.000000e+00> : vector<8x8xf32>
    %218 = tpu.matmul %213, %215, %cst_66 {dimension_numbers = #tpu.dot_dimension_numbers<[1], [1], [0], [0], [0, 0, 1, 0], [], []>} : vector<8x8xbf16>, vector<8x8xbf16>, vector<8x8xf32> -> vector<8x8xf32>
    %cst_67 = arith.constant 0.353553385 : f32
    %219 = vector.broadcast %cst_67 : f32 to vector<8x8xf32>
    %220 = arith.mulf %218, %219 : vector<8x8xf32>
    %cst_68 = arith.constant dense<0xFF800000> : vector<8xf32>
    %221 = vector.multi_reduction <maximumf>, %220, %cst_68 [1] : vector<8x8xf32> to vector<8xf32>
    %222 = vector.shape_cast %221 : vector<8xf32> to vector<8x1xf32>
    %223 = vector.broadcast %222 : vector<8x1xf32> to vector<8x8xf32>
    %224 = arith.subf %220, %223 : vector<8x8xf32>
    %225 = math.exp %224 : vector<8x8xf32>
    %cst_69 = arith.constant dense<0.000000e+00> : vector<8xf32>
    %226 = vector.multi_reduction <add>, %225, %cst_69 [1] : vector<8x8xf32> to vector<8xf32>
    %227 = vector.shape_cast %226 : vector<8xf32> to vector<8x1xf32>
    %228 = tpu.reciprocal %227 {approx = true} : vector<8x1xf32> -> vector<8x1xf32>
    %229 = vector.broadcast %228 : vector<8x1xf32> to vector<8x8xf32>
    %230 = arith.mulf %225, %229 : vector<8x8xf32>
    %231 = arith.truncf %230 : vector<8x8xf32> to vector<8x8xbf16>
    %cst_70 = arith.constant dense<0.000000e+00> : vector<8x8xf32>
    %232 = tpu.matmul %231, %217, %cst_70 {dimension_numbers = #tpu.dot_dimension_numbers<[1], [0], [0], [1], [0, 0, 1, 1], [], []>} : vector<8x8xbf16>, vector<8x8xbf16>, vector<8x8xf32> -> vector<8x8xf32>
    %233 = arith.truncf %232 : vector<8x8xf32> to vector<8x8xbf16>
    %234 = vector.extract_strided_slice %16 {offsets = [24, 0], sizes = [8, 32], strides = [1, 1]} : vector<32x32xbf16> to vector<8x32xbf16>
    %cst_71 = arith.constant dense<0.000000e+00> : vector<8x32xf32>
    %235 = tpu.matmul %233, %234, %cst_71 {dimension_numbers = #tpu.dot_dimension_numbers<[1], [0], [0], [1], [0, 0, 1, 1], [], []>} : vector<8x8xbf16>, vector<8x32xbf16>, vector<8x32xf32> -> vector<8x32xf32>
    %236 = arith.addf %211, %235 : vector<8x32xf32>
    %237 = tpu.concatenate %132, %236 in 0 : vector<8x32xf32>, vector<8x32xf32> -> vector<16x32xf32>
    %238 = vector.broadcast %10 : vector<1x32xf32> to vector<16x32xf32>
    %239 = arith.addf %237, %238 : vector<16x32xf32>
    %240 = arith.addf %5, %239 : vector<16x32xf32>
    %cst_72 = arith.constant dense<0.000000e+00> : vector<16xf32>
    %241 = vector.multi_reduction <add>, %240, %cst_72 [1] : vector<16x32xf32> to vector<16xf32>
    %242 = vector.shape_cast %241 : vector<16xf32> to vector<16x1xf32>
    %cst_73 = arith.constant 3.200000e+01 : f32
    %243 = vector.broadcast %cst_73 : f32 to vector<16x1xf32>
    %244 = arith.divf %242, %243 : vector<16x1xf32>
    %245 = vector.broadcast %244 : vector<16x1xf32> to vector<16x32xf32>
    %246 = arith.subf %240, %245 : vector<16x32xf32>
    %247 = arith.mulf %246, %246 : vector<16x32xf32>
    %cst_74 = arith.constant dense<0.000000e+00> : vector<16xf32>
    %248 = vector.multi_reduction <add>, %247, %cst_74 [1] : vector<16x32xf32> to vector<16xf32>
    %249 = vector.shape_cast %248 : vector<16xf32> to vector<16x1xf32>
    %cst_75 = arith.constant 3.200000e+01 : f32
    %250 = vector.broadcast %cst_75 : f32 to vector<16x1xf32>
    %251 = arith.divf %249, %250 : vector<16x1xf32>
    %252 = vector.broadcast %244 : vector<16x1xf32> to vector<16x32xf32>
    %253 = arith.subf %240, %252 : vector<16x32xf32>
    %cst_76 = arith.constant 9.99999974E-6 : f32
    %254 = vector.broadcast %cst_76 : f32 to vector<16x1xf32>
    %255 = arith.addf %251, %254 : vector<16x1xf32>
    %256 = math.rsqrt %255 : vector<16x1xf32>
    %257 = vector.broadcast %256 : vector<16x1xf32> to vector<16x32xf32>
    %258 = arith.mulf %253, %257 : vector<16x32xf32>
    %259 = vector.broadcast %11 : vector<1x32xf32> to vector<16x32xf32>
    %260 = arith.mulf %258, %259 : vector<16x32xf32>
    %261 = vector.broadcast %12 : vector<1x32xf32> to vector<16x32xf32>
    %262 = arith.addf %260, %261 : vector<16x32xf32>
    %263 = arith.truncf %262 : vector<16x32xf32> to vector<16x32xbf16>
    %c0_77 = arith.constant 0 : index
    %c0_78 = arith.constant 0 : index
    %264 = vector.load %arg5[%c0_77, %c0_78] : memref<32x64xbf16, #tpu.memory_space<vmem>>, vector<32x64xbf16>
    %cst_79 = arith.constant dense<0.000000e+00> : vector<16x64xf32>
    %265 = tpu.matmul %263, %264, %cst_79 {dimension_numbers = #tpu.dot_dimension_numbers<[1], [0], [0], [1], [0, 0, 1, 1], [], []>} : vector<16x32xbf16>, vector<32x64xbf16>, vector<16x64xf32> -> vector<16x64xf32>
    %c0_80 = arith.constant 0 : index
    %c0_81 = arith.constant 0 : index
    %266 = vector.load %arg8[%c0_80, %c0_81] : memref<1x64xf32, #tpu.memory_space<vmem>>, vector<1x64xf32>
    %267 = vector.broadcast %266 : vector<1x64xf32> to vector<16x64xf32>
    %268 = arith.addf %265, %267 : vector<16x64xf32>
    %cst_82 = arith.constant 0.000000e+00 : f32
    %269 = vector.broadcast %cst_82 : f32 to vector<16x64xf32>
    %270 = arith.maximumf %268, %269 : vector<16x64xf32>
    %271 = arith.truncf %270 : vector<16x64xf32> to vector<16x64xbf16>
    %c0_83 = arith.constant 0 : index
    %c0_84 = arith.constant 0 : index
    %272 = vector.load %arg6[%c0_83, %c0_84] : memref<64x32xbf16, #tpu.memory_space<vmem>>, vector<64x32xbf16>
    %cst_85 = arith.constant dense<0.000000e+00> : vector<16x32xf32>
    %273 = tpu.matmul %271, %272, %cst_85 {dimension_numbers = #tpu.dot_dimension_numbers<[1], [0], [0], [1], [0, 0, 1, 1], [], []>} : vector<16x64xbf16>, vector<64x32xbf16>, vector<16x32xf32> -> vector<16x32xf32>
    %274 = vector.broadcast %13 : vector<1x32xf32> to vector<16x32xf32>
    %275 = arith.addf %273, %274 : vector<16x32xf32>
    %276 = arith.addf %262, %275 : vector<16x32xf32>
    %cst_86 = arith.constant dense<0.000000e+00> : vector<16xf32>
    %277 = vector.multi_reduction <add>, %276, %cst_86 [1] : vector<16x32xf32> to vector<16xf32>
    %278 = vector.shape_cast %277 : vector<16xf32> to vector<16x1xf32>
    %cst_87 = arith.constant 3.200000e+01 : f32
    %279 = vector.broadcast %cst_87 : f32 to vector<16x1xf32>
    %280 = arith.divf %278, %279 : vector<16x1xf32>
    %281 = vector.broadcast %280 : vector<16x1xf32> to vector<16x32xf32>
    %282 = arith.subf %276, %281 : vector<16x32xf32>
    %283 = arith.mulf %282, %282 : vector<16x32xf32>
    %cst_88 = arith.constant dense<0.000000e+00> : vector<16xf32>
    %284 = vector.multi_reduction <add>, %283, %cst_88 [1] : vector<16x32xf32> to vector<16xf32>
    %285 = vector.shape_cast %284 : vector<16xf32> to vector<16x1xf32>
    %cst_89 = arith.constant 3.200000e+01 : f32
    %286 = vector.broadcast %cst_89 : f32 to vector<16x1xf32>
    %287 = arith.divf %285, %286 : vector<16x1xf32>
    %288 = vector.broadcast %280 : vector<16x1xf32> to vector<16x32xf32>
    %289 = arith.subf %276, %288 : vector<16x32xf32>
    %cst_90 = arith.constant 9.99999974E-6 : f32
    %290 = vector.broadcast %cst_90 : f32 to vector<16x1xf32>
    %291 = arith.addf %287, %290 : vector<16x1xf32>
    %292 = math.rsqrt %291 : vector<16x1xf32>
    %293 = vector.broadcast %292 : vector<16x1xf32> to vector<16x32xf32>
    %294 = arith.mulf %289, %293 : vector<16x32xf32>
    %295 = vector.broadcast %14 : vector<1x32xf32> to vector<16x32xf32>
    %296 = arith.mulf %294, %295 : vector<16x32xf32>
    %297 = vector.broadcast %15 : vector<1x32xf32> to vector<16x32xf32>
    %298 = arith.addf %296, %297 : vector<16x32xf32>
    %299 = vector.extract_strided_slice %298 {offsets = [0, 0], sizes = [8, 32], strides = [1, 1]} : vector<16x32xf32> to vector<8x32xf32>
    %300 = vector.extract_strided_slice %298 {offsets = [8, 0], sizes = [8, 32], strides = [1, 1]} : vector<16x32xf32> to vector<8x32xf32>
    %301 = vector.shape_cast %299 : vector<8x32xf32> to vector<8x1x32xf32>
    %302 = vector.shape_cast %300 : vector<8x32xf32> to vector<8x1x32xf32>
    %303 = tpu.concatenate %301, %302 in 1 : vector<8x1x32xf32>, vector<8x1x32xf32> -> vector<8x2x32xf32>
    %c0_91 = arith.constant 0 : index
    %c0_92 = arith.constant 0 : index
    %c0_93 = arith.constant 0 : index
    %304 = vector.load %arg9[%c0_91, %c0_92, %c0_93] : memref<8x2x32xf32, #tpu.memory_space<vmem>>, vector<8x2x32xf32>
    tpu.vector_store %arg9[%c0_91, %c0_92, %c0_93], %303 {strides = array<i32>} : memref<8x2x32xf32, #tpu.memory_space<vmem>>, vector<8x2x32xf32>,
    return
  }
}

</mosaic_0001>

<bundles_post_ra>
// kernel: tpu_custom_call.1
= control target key start
LH: loop header
LB: loop body
LE: loop exit
PB: predicated region body
PF: predicated region fallthrough
CT: control target
= control target key end

     0   :  { %14 = vsyncpa [#allocation3], 0  ;;  %s2940_s0 = inlined_call_operand.vmem [shape: f32[8,2,32], index: 0, kind: input, shape index: {}]   ;;  %s2941_s1 = inlined_call_operand.vmem [shape: bf16[32,32], index: 1, kind: input, shape index: {}]   ;;  %s2942_s2 = inlined_call_operand.vmem [shape: bf16[32,32], index: 2, kind: input, shape index: {}]   ;;  %s2943_s3 = inlined_call_operand.hbm [shape: bf16[32,32], index: 3, kind: input, shape index: {}]   ;;  %s2944_s4 = inlined_call_operand.hbm [shape: bf16[32,32], index: 4, kind: input, shape index: {}]   ;;  %s2945_s5 = inlined_call_operand.hbm [shape: bf16[32,64], index: 5, kind: input, shape index: {}]   ;;  %s2946_s6 = inlined_call_operand.vmem [shape: bf16[64,32], index: 6, kind: input, shape index: {}]   ;;  %s2947_s7 = inlined_call_operand.hbm [shape: f32[9,32], index: 7, kind: input, shape index: {}]   ;;  %s2948_s8 = inlined_call_operand.vmem [shape: f32[1,64], index: 8, kind: input, shape index: {}]   ;;  %s2949_s9 = inlined_call_operand.hbm [shape: f32[8,2,32], index: 9, kind: output, shape index: {}]  }
   0x1   :  { %15 = vsyncpa [#allocation6], 0 }
   0x2   :  { %16 = vsyncpa [#allocation9], 0 }
   0x3   :  { %17 = vsyncpa [#allocation4], 0  ;;  %s2506_s30 = smov [#allocation5]   ;;  %s2507_s11 = smov [#allocation2]  }
   0x4   :  { %s41_s10 = sshll.u32 %s2506_s30, 4  ;;  %s29_s12 = sshll.u32 %s2507_s11, 4  ;;  %s42_s10 = int_to_ptr.vmem [resolvable:$true] %s41_s10  ;;  %s30_s12 = int_to_ptr.vmem [resolvable:$true] %s29_s12 }
   0x5   :  { %s2406_s13 = scalar_lea.vmem %s42_s10, 256  ;;  %p2411_p1 = scmp.lt.s32.totalorder %s42_s10, %s42_s10 }
   0x6   :  { %p2407_p0 = scmp.ne.s32.totalorder %s42_s10, %s2406_s13  ;;  %p2412_p2 = scmp.lt.s32.totalorder %s2406_s13, %s2406_s13 }
   0x8   :  { %p2413_p3 = por %p2412_p2, %p2411_p1 }
   0xa   :  { %p2414_p4 = pnand %p2413_p3, %p2407_p0 }
   0xc   :  { %2417 = shalt.err (!%p2414_p4)
}
   0xd   :  { %s2508_s14 = smov 64   ;;  %s2509_s15 = smov 4  }
   0xe   :  { %47 = dma.hbm_to_vmem [thread:$0]  %s2944_s4, 256, %s42_s10, [#allocation6], %s2508_s14, %s2508_s14, %s2509_s15  }
   0xf   :  { %s2426_s18 = scalar_lea.vmem %s30_s12, 256  ;;  %p2431_p6 = scmp.lt.s32.totalorder %s30_s12, %s30_s12 }
  0x10   :  { %p2427_p5 = scmp.ne.s32.totalorder %s30_s12, %s2426_s18  ;;  %p2432_p7 = scmp.lt.s32.totalorder %s2426_s18, %s2426_s18 }
  0x12   :  { %p2433_p8 = por %p2432_p7, %p2431_p6 }
  0x14   :  { %p2434_p9 = pnand %p2433_p8, %p2427_p5 }
  0x16   :  { %2437 = shalt.err (!%p2434_p9)
}
  0x17   :  { %35 = dma.hbm_to_vmem [thread:$0]  %s2943_s3, 256, %s30_s12, [#allocation3], %s2508_s14, %s2508_s14, %s2509_s15  }
  0x18   :  { %s2510_s21 = smov [#allocation7]   ;;  %s2511_s23 = smov [#allocation8]  }
  0x19   :  { %s53_s22 = sshll.u32 %s2510_s21, 4  ;;  %s67_s24 = sshll.u32 %s2511_s23, 4  ;;  %s54_s22 = int_to_ptr.vmem [resolvable:$true] %s53_s22  ;;  %s68_s24 = int_to_ptr.vmem [resolvable:$true] %s67_s24 }
  0x1a   :  { %s2446_s25 = scalar_lea.vmem %s54_s22, 256  ;;  %p2451_p11 = scmp.lt.s32.totalorder %s54_s22, %s54_s22 }
  0x1b   :  { %p2447_p10 = scmp.ne.s32.totalorder %s54_s22, %s2446_s25  ;;  %p2452_p12 = scmp.lt.s32.totalorder %s2446_s25, %s2446_s25 }
  0x1d   :  { %p2453_p13 = por %p2452_p12, %p2451_p11 }
  0x1f   :  { %p2454_p0 = pnand %p2453_p13, %p2447_p10 }
  0x21   :  { %2457 = shalt.err (!%p2454_p0)
}
  0x22   :  { %59 = dma.hbm_to_vmem [thread:$0]  %s2945_s5, 256, %s54_s22, [#allocation6], %s2508_s14, %s2508_s14, %s2509_s15  }
  0x23   :  { %s2466_s27 = scalar_lea.vmem %s68_s24, 256  ;;  %p2471_p2 = scmp.lt.s32.totalorder %s68_s24, %s68_s24 }
  0x24   :  { %p2467_p1 = scmp.ne.s32.totalorder %s68_s24, %s2466_s27  ;;  %p2472_p3 = scmp.lt.s32.totalorder %s2466_s27, %s2466_s27 }
  0x26   :  { %p2473_p4 = por %p2472_p3, %p2471_p2 }
  0x28   :  { %p2474_p5 = pnand %p2473_p4, %p2467_p1 }
  0x2a   :  { %2477 = shalt.err (!%p2474_p5)
}
  0x2b   :  { %s2512_s3 = smov 128   ;;  %s2513_s28 = smov 8  }
  0x2c   :  { %73 = dma.hbm_to_vmem [thread:$0]  %s2947_s7, 256, %s68_s24, [#allocation9], %s2512_s3, %s2512_s3, %s2513_s28  }
  0x2d   :  { %2498 = dma.done.wait [#allocation3], 256  }
  0x2e   :  { %2499 = vsyncadd [#allocation3], 4294967040 }
  0x2f   :  { %2500 = dma.done.wait [#allocation6], 512  }
  0x30   :  { %2501 = vsyncadd [#allocation6], 4294966784 }
  0x31   :  { %2502 = dma.done.wait [#allocation9], 256  }
  0x32   :  { %2503 = vsyncadd [#allocation9], 4294967040  ;;  %v2514_v0 = vmov 0.0   ;;  %vm2515_vm0 = vmmov 0   ;;  %vm106_vm1 = vcmask 1041409   ;;  %vm109_vm2 = vcmask 1042434  }
  0x33   :  { %2141 = vmatprep.subr.bf16.mxu1 %v2514_v0  ;;  %2145 = vmatprep.mubr.msk.bf16.mxu1 %vm2515_vm0, %v2514_v0  ;;  %vm112_vm3 = vcmask 1043459   ;;  %vm115_vm4 = vcmask 1044484   ;;  %vm118_vm5 = vcmask 1045509   ;;  %v2346_v1 = vld [vmem:[%s2941_s1 + $0x8] sm:$0xff]   ;;  %vm121_vm6 = vcmask 1046534   ;;  %v2347_v2 = vld [vmem:[%s2941_s1] sm:$0xff]  }
  0x34   :  { %2157 = vmatprep.subr.bf16.mxu0 %v2514_v0  ;;  %2161 = vmatprep.mubr.msk.bf16.mxu0 %vm2515_vm0, %v2514_v0  ;;  %vm124_vm7 = vcmask 1047559   ;;  %v89_v3 = vld [vmem:[%s2940_s0] sm:$0x3]  ;;  %v90_v4 = vld [vmem:[%s2940_s0 + $0x2] sm:$0x3]  ;;  %vm176_vm8 = vcmask 261120  }
  0x35   :  { %2142 = vmatpush3.bf16.msra.mxu1 %v2346_v1  ;;  %v91_v5 = vld [vmem:[%s2940_s0 + $0x4] sm:$0x3]  ;;  %v92_v6 = vld [vmem:[%s2940_s0 + $0x6] sm:$0x3]  ;;  %v93_v7 = vld [vmem:[%s2940_s0 + $0x8] sm:$0x3] }
  0x36   :  { %2143 = vmatprep.subr.bf16.mxu1 %v2514_v0  ;;  %v94_v8 = vld [vmem:[%s2940_s0 + $0xa] sm:$0x3]  ;;  %v95_v9 = vld [vmem:[%s2940_s0 + $0xc] sm:$0x3]  ;;  %v96_v10 = vld [vmem:[%s2940_s0 + $0xe] sm:$0x3] }
  0x37   :  { %v105_v11 = vrot.slane %v90_v4, 7  ;;  %v108_v12 = vrot.slane %v91_v5, 6  ;;  %v111_v13 = vrot.slane %v92_v6, 5  ;;  %v114_v14 = vrot.slane %v93_v7, 4  ;;  %v2348_v39 = vld [vmem:[%s2942_s2 + $0x8] sm:$0xff]   ;;  %v2349_v41 = vld [vmem:[%s2942_s2] sm:$0xff]  }
  0x38   :  { %v117_v15 = vrot.slane %v94_v8, 3  ;;  %v120_v16 = vrot.slane %v95_v9, 2  ;;  %v123_v18 = vrot.slane %v96_v10, 1  ;;  %v127_v19 = vrot.slane %v89_v3, 1  ;;  %v2025_v44 = vld [vmem:[#allocation8] ss:$0 sm:$0xff] }
  0x39   :  { %2144 = vmatpush3.bf16.msra.mxu1 %v2347_v2  ;;  %v107_v17 = vsel %vm106_vm1, %v105_v11, %v89_v3  ;;  %v129_v20 = vrot.slane %v91_v5, 7  ;;  %v131_v22 = vrot.slane %v92_v6, 6  ;;  %v133_v23 = vrot.slane %v93_v7, 5  ;;  %v2029_v48 = vld [vmem:[#allocation8 + $0x1] ss:$0 sm:$0xff]  ;;  %s2516_s2 = smov 120  }
  0x3a   :  { %v110_v21 = vsel %vm109_vm2, %v108_v12, %v107_v17  ;;  %v135_v24 = vrot.slane %v94_v8, 4  ;;  %2149 = vmatprep.subr.bf16.mxu1 %v2514_v0  ;;  %v128_v26 = vsel %vm106_vm1, %v90_v4, %v127_v19  ;;  %v137_v27 = vrot.slane %v95_v9, 3  ;;  %v2350_v59 = vld [vmem:[#allocation2 + $0x8] sm:$0xff]   ;;  %v2351_v60 = vld [vmem:[#allocation2] sm:$0xff]   ;;  %s2517_s28 = smov 112   ;;  %s2518_s29 = smov 104  }
  0x3b   :  { %v113_v25 = vsel %vm112_vm3, %v111_v13, %v110_v21  ;;  %v139_v28 = vrot.slane %v96_v10, 2  ;;  %v130_v30 = vsel %vm109_vm2, %v129_v20, %v128_v26  ;;  %vm346_vm9 = vcmask 64512   ;;  %2158 = vmatpush3.bf16.msra.mxu0 %v2350_v59  ;;  %v2033_v20 = vld [vmem:[#allocation8 + $0x2] ss:$0 sm:$0xff] }
  0x3c   :  { %v116_v29 = vsel %vm115_vm4, %v114_v14, %v113_v25  ;;  %v132_v32 = vsel %vm112_vm3, %v131_v22, %v130_v30  ;;  %2159 = vmatprep.subr.bf16.mxu0 %v2514_v0  ;;  %vm409_vm10 = vcmask 1043456   ;;  %vm1755_vm11 = vcmask 523264  }
  0x3d   :  { %v119_v31 = vsel %vm118_vm5, %v117_v15, %v116_v29  ;;  %v134_v34 = vsel %vm115_vm4, %v133_v23, %v132_v32  ;;  %vm1988_vm12 = vcmask 1040384   ;;  %vm1997_vm13 = vcmask 254976  }
  0x3e   :  { %v122_v33 = vsel %vm121_vm6, %v120_v16, %v119_v31  ;;  %v136_v36 = vsel %vm118_vm5, %v135_v24, %v134_v34 }
  0x3f   :  { %v2634_v35 = vsel %vm124_vm7, %v123_v18, %v122_v33  ;;  %v138_v37 = vsel %vm121_vm6, %v137_v27, %v136_v36  ;;  %2160 = vmatpush3.bf16.msra.mxu0 %v2351_v60 }
  0x40   :  { %v2639_v38 = vsel %vm124_vm7, %v139_v28, %v138_v37  ;;  %2171 = vmatprep.subr.bf16.mxu0 %v2514_v0  ;;  %v153_v37 = vld [vmem:[#allocation5 + $0x4] sm:$0xf] }
  0x41   :  { %v142_v40 = vpack.c.bf16 %v2639_v38, %v2634_v35 }
  0x43   :  { %2146 = vmatmul.mubr.msk.bf16.vlgmr.msra.gmra.mxu1 %vm176_vm8, %v142_v40  ;;  %2162 = vmatmul.mubr.msk.bf16.vlgmr.msra.gmra.mxu0 %vm176_vm8, %v142_v40 }
  0x44   :  { %2150 = vmatpush3.bf16.msra.mxu1 %v2348_v39  ;;  %2153 = vmatprep.mubr.msk.bf16.mxu1 %vm2515_vm0, %v2514_v0  ;;  %v2709_v39 = vsel %vm409_vm10, %v153_v37, 0 }
  0x45   :  { %2151 = vmatprep.subr.bf16.mxu1 %v2514_v0  ;;  %2173 = vmatprep.mubr.msk.bf16.mxu0 %vm2515_vm0, %v2514_v0 }
  0x48   :  { %2152 = vmatpush3.bf16.msra.mxu1 %v2349_v41 }
  0x49   :  { %2165 = vmatprep.subr.bf16.mxu1 %v2514_v0 }
  0x4b   :  { %2154 = vmatmul.mubr.msk.bf16.vlgmr.msra.gmra.mxu1 %vm176_vm8, %v142_v40 }
  0x4c   :  { %2167 = vmatprep.mubr.msk.bf16.mxu1 %vm2515_vm0, %v2514_v0 }
 0x103   :  { %v214_v42 = vpop.f32.mrf.mxu1  ;;  %v336_v16 = vpop.f32.mrf.mxu0 }
 0x104   :  { %v215_v52 = vadd.f32 %v2025_v44, %v214_v42  ;;  %v337_v21 = vadd.f32 %v2033_v20, %v336_v16 }
 0x105   :  { %v2147_v43 = vpop.f32.mrf.mxu1  ;;  %v2163_v17 = vpop.f32.mrf.mxu0 }
 0x106   :  { %v2667_v58 = vpack.c.bf16 %v215_v52, %v215_v52  ;;  %v2689_v22 = vpack.c.bf16 %v337_v21, %v337_v21 }
 0x107   :  { %v217_v45 = vpop.f32.mrf.mxu1  ;;  %v339_v23 = vpop.f32.mrf.mxu0 }
 0x108   :  { %v2657_v46 = vadd.f32 %v2025_v44, %v217_v45  ;;  %v2691_v24 = vadd.f32 %v2033_v20, %v339_v23  ;;  %v411_v25 = vsel %vm409_vm10, %v2689_v22, 0  ;;  %v152_v44 = vld [vmem:[#allocation5] sm:$0xf] }
 0x109   :  { %v2148_v47 = vpop.f32.mrf.mxu1  ;;  %v2164_v26 = vpop.f32.mrf.mxu0  ;;  %2172 = vmatpush3.bf16.msra.mxu0 %v411_v25 }
 0x10a   :  { %2183 = vmatprep.subr.bf16.mxu0 %v2514_v0 }
 0x10b   :  { %v275_v49 = vpop.f32.mrf.mxu1 }
 0x10c   :  { %v276_v50 = vadd.f32 %v2029_v48, %v275_v49 }
 0x10d   :  { %v2155_v51 = vpop.f32.mrf.mxu1 }
 0x10e   :  { %v2659_v53 = vpack.c.bf16 %v276_v50, %v276_v50 }
 0x10f   :  { %v278_v54 = vpop.f32.mrf.mxu1 }
 0x110   :  { %v2661_v55 = vadd.f32 %v2029_v48, %v278_v54  ;;  %458 = vrot.lane.b32.xlu0 %v2659_v53, %s2516_s2  ;;  %v351_v56 = vsel %vm346_vm9, %v2659_v53, 0  ;;  %v2716_v48 = vsel %vm409_vm10, %v152_v44, 0 }
 0x111   :  { %v2156_v57 = vpop.f32.mrf.mxu1  ;;  %2166 = vmatpush3.bf16.xpose.msra.mxu1 %v351_v56 }
 0x112   :  { %2177 = vmatprep.subr.bf16.mxu1 %v2514_v0 }
 0x114   :  { %455 = vrot.lane.b32.xlu0 %v2667_v58, %s2516_s2 }
 0x118   :  { %2168 = vmatmul.mubr.msk.bf16.vlgmr.msra.gmra.mxu1 %vm346_vm9, %v2667_v58 }
 0x119   :  { %2179 = vmatprep.mubr.msk.bf16.mxu1 %vm2515_vm0, %v2514_v0 }
 0x182   :  { %v459_v61 = vpop.permute.xlu0 %458 }
 0x183   :  { %v464_v62 = vsel %vm346_vm9, %v459_v61, 0 }
 0x184   :  { %2178 = vmatpush3.bf16.xpose.msra.mxu1 %v464_v62 }
 0x185   :  { %2189 = vmatprep.subr.bf16.mxu1 %v2514_v0 }
 0x186   :  { %v456_v63 = vpop.permute.xlu0 %455 }
 0x18b   :  { %2180 = vmatmul.mubr.msk.bf16.vlgmr.msra.gmra.mxu1 %vm346_vm9, %v456_v63 }
 0x18c   :  { %2191 = vmatprep.mubr.msk.bf16.mxu1 %vm2515_vm0, %v2514_v0  ;;  %2190 = vmatpush3.bf16.msra.mxu1 %v2709_v39 }
 0x18d   :  { %2201 = vmatprep.subr.bf16.mxu1 %v2514_v0 }
 0x1d8   :  { %v387_v1 = vpop.f32.mrf.mxu1 }
 0x1d9   :  { %v393_v2 = vmul.f32 0.35355338, %v387_v1 }
 0x1da   :  { %v2169_v3 = vpop.f32.mrf.mxu1 }
 0x1db   :  { %v394_v4 = vsel %vm346_vm9, %v393_v2, -inf }
 0x1dc   :  { %395 = vmax.xlane.f32.xlu1 %v394_v4  ;;  %v390_v5 = vpop.f32.mrf.mxu1 }
 0x1de   :  { %v2170_v6 = vpop.f32.mrf.mxu1 }
 0x24b   :  { %v500_v7 = vpop.f32.mrf.mxu1 }
 0x24c   :  { %v506_v8 = vmul.f32 0.35355338, %v500_v7 }
 0x24d   :  { %v2181_v9 = vpop.f32.mrf.mxu1 }
 0x24e   :  { %v507_v10 = vsel %vm346_vm9, %v506_v8, -inf }
 0x24f   :  { %508 = vmax.xlane.f32.xlu1 %v507_v10  ;;  %v503_v11 = vpop.f32.mrf.mxu1 }
 0x251   :  { %v2182_v12 = vpop.f32.mrf.mxu1 }
 0x265   :  { %v396_v13 = vpop.xlane.xlu1 %395 }
 0x266   :  { %v397_v14 = vsub.f32 %v393_v2, %v396_v13 }
 0x268   :  { %v398_v15 = vmul.f32 1.442695, %v397_v14 }
 0x26a   :  { %2358 = vpow2.f32 %v398_v15 }
 0x277   :  { %v2359_v18 = vpop.eup %2358 }
 0x278   :  { %v400_v19 = vsel %vm346_vm9, %v2359_v18, 0.0 }
 0x279   :  { %401 = vadd.xlane.f32.xlu0 %v400_v19 }
 0x28f   :  { %724 = vrot.lane.b32.xlu0 %v2689_v22, %s2517_s28 }
 0x2d8   :  { %v509_v27 = vpop.xlane.xlu1 %508 }
 0x2d9   :  { %v510_v28 = vsub.f32 %v506_v8, %v509_v27 }
 0x2db   :  { %v511_v29 = vmul.f32 1.442695, %v510_v28 }
 0x2dd   :  { %2360 = vpow2.f32 %v511_v29 }
 0x2ea   :  { %v2361_v30 = vpop.eup %2360 }
 0x2eb   :  { %v513_v31 = vsel %vm346_vm9, %v2361_v30, 0.0 }
 0x2ec   :  { %514 = vadd.xlane.f32.xlu1 %v513_v31 }
 0x2fd   :  { %520 = vrot.lane.b32.xlu1 %v2689_v22, %s2516_s2 }
 0x301   :  { %663 = vrot.lane.b32.xlu1 %v2659_v53, %s2517_s28 }
 0x302   :  { %v402_v32 = vpop.xlane.xlu0 %401 }
 0x303   :  { %2362 = vrcp.f32 %v402_v32 }
 0x305   :  { %661 = vrot.lane.b32.xlu1 %v2667_v58, %s2517_s28 }
 0x306   :  { %v725_v49 = vpop.permute.xlu0 %724 }
 0x307   :  { %v730_v54 = vsel %vm409_vm10, %v725_v49, 0 }
 0x310   :  { %v2363_v33 = vpop.eup %2362 }
 0x311   :  { %v404_v34 = vmul.f32 %v2363_v33, %v2359_v18 }
 0x313   :  { %v405_v36 = vpack.c.bf16 %v404_v34, %v404_v34 }
 0x315   :  { %2174 = vmatmul.mubr.msk.bf16.vlgmr.msra.gmra.mxu0 %vm346_vm9, %v405_v36 }
 0x316   :  { %2185 = vmatprep.mubr.msk.bf16.mxu0 %vm2515_vm0, %v2514_v0 }
 0x375   :  { %v515_v40 = vpop.xlane.xlu1 %514 }
 0x376   :  { %2364 = vrcp.f32 %v515_v40 }
 0x379   :  { %v521_v41 = vpop.permute.xlu1 %520 }
 0x37a   :  { %v526_v42 = vsel %vm409_vm10, %v521_v41, 0 }
 0x37b   :  { %2184 = vmatpush3.bf16.msra.mxu0 %v526_v42 }
 0x37c   :  { %2195 = vmatprep.subr.bf16.mxu0 %v2514_v0 }
 0x37d   :  { %v664_v59 = vpop.permute.xlu1 %663 }
 0x37e   :  { %v669_v63 = vsel %vm346_vm9, %v664_v59, 0 }
 0x381   :  { %v662_v3 = vpop.permute.xlu1 %661 }
 0x383   :  { %v2365_v43 = vpop.eup %2364 }
 0x384   :  { %v517_v45 = vmul.f32 %v2365_v43, %v2361_v30 }
 0x386   :  { %v518_v47 = vpack.c.bf16 %v517_v45, %v517_v45 }
 0x388   :  { %2186 = vmatmul.mubr.msk.bf16.vlgmr.msra.gmra.mxu0 %vm346_vm9, %v518_v47 }
 0x389   :  { %2196 = vmatpush3.bf16.msra.mxu0 %v2716_v48  ;;  %2197 = vmatprep.mubr.msk.bf16.mxu0 %vm2515_vm0, %v2514_v0 }
 0x38a   :  { %2207 = vmatprep.subr.bf16.mxu0 %v2514_v0 }
 0x3d5   :  { %v447_v50 = vpop.f32.mrf.mxu0 }
 0x3d6   :  { %v453_v51 = vpack.c.bf16 %v447_v50, %v447_v50 }
 0x3d7   :  { %v2175_v52 = vpop.f32.mrf.mxu0 }
 0x3d8   :  { %2198 = vmatmul.mubr.msk.bf16.vlgmr.msra.gmra.mxu0 %vm346_vm9, %v453_v51 }
 0x3d9   :  { %2208 = vmatpush3.bf16.msra.mxu0 %v730_v54  ;;  %v450_v56 = vpop.f32.mrf.mxu0  ;;  %2209 = vmatprep.mubr.msk.bf16.mxu0 %vm2515_vm0, %v2514_v0  ;;  %v2768_v54 = vpack.c.bf16 %v2661_v55, %v2661_v55 }
 0x3da   :  { %2219 = vmatprep.subr.bf16.mxu0 %v2514_v0  ;;  %v2774_v56 = vpack.c.bf16 %v2657_v46, %v2657_v46 }
 0x3db   :  { %v2176_v57 = vpop.f32.mrf.mxu0 }
 0x448   :  { %v562_v60 = vpop.f32.mrf.mxu0 }
 0x449   :  { %v568_v61 = vpack.c.bf16 %v562_v60, %v562_v60 }
 0x44a   :  { %v2187_v62 = vpop.f32.mrf.mxu0 }
 0x44b   :  { %2192 = vmatmul.mubr.msk.bf16.vlgmr.msra.gmra.mxu1 %vm346_vm9, %v568_v61  ;;  %v155_v62 = vld [vmem:[#allocation5 + $0xc] sm:$0xf] }
 0x44c   :  { %2202 = vmatpush3.bf16.xpose.msra.mxu1 %v669_v63  ;;  %v565_v1 = vpop.f32.mrf.mxu0  ;;  %2203 = vmatprep.mubr.msk.bf16.mxu1 %vm2515_vm0, %v2514_v0  ;;  %v2783_v63 = vsel %vm409_vm10, %v155_v62, 0 }
 0x44d   :  { %2213 = vmatprep.subr.bf16.mxu1 %v2514_v0 }
 0x44e   :  { %v2188_v2 = vpop.f32.mrf.mxu0 }
 0x453   :  { %2204 = vmatmul.mubr.msk.bf16.vlgmr.msra.gmra.mxu1 %vm346_vm9, %v662_v3 }
 0x454   :  { %2215 = vmatprep.mubr.msk.bf16.mxu1 %vm2515_vm0, %v2514_v0 }
 0x498   :  { %v2736_v4 = vpop.f32.mrf.mxu0 }
 0x49a   :  { %v2199_v5 = vpop.f32.mrf.mxu0 }
 0x49c   :  { %v658_v6 = vpop.f32.mrf.mxu0 }
 0x49d   :  { %v986_v6 = vsel %vm346_vm9, %v2768_v54, 0 }
 0x49e   :  { %v2200_v7 = vpop.f32.mrf.mxu0 }
 0x50b   :  { %v2738_v8 = vpop.f32.mrf.mxu1 }
 0x50c   :  { %v656_v57 = vadd.f32 %v2736_v4, %v2738_v8 }
 0x50d   :  { %v2193_v9 = vpop.f32.mrf.mxu1 }
 0x50f   :  { %v612_v10 = vpop.f32.mrf.mxu1 }
 0x510   :  { %v2808_v10 = vpack.c.bf16 %v2691_v24, %v2691_v24 }
 0x511   :  { %v2194_v11 = vpop.f32.mrf.mxu1 }
 0x513   :  { %v705_v12 = vpop.f32.mrf.mxu1 }
 0x514   :  { %v711_v13 = vmul.f32 0.35355338, %v705_v12 }
 0x515   :  { %v2205_v14 = vpop.f32.mrf.mxu1 }
 0x516   :  { %v712_v15 = vsel %vm346_vm9, %v711_v13, -inf  ;;  %v1045_v14 = vsel %vm409_vm10, %v2808_v10, 0 }
 0x517   :  { %713 = vmax.xlane.f32.xlu1 %v712_v15  ;;  %v708_v16 = vpop.f32.mrf.mxu1 }
 0x519   :  { %v2206_v17 = vpop.f32.mrf.mxu1 }
 0x5a0   :  { %v714_v18 = vpop.xlane.xlu1 %713 }
 0x5a1   :  { %v715_v19 = vsub.f32 %v711_v13, %v714_v18 }
 0x5a3   :  { %v716_v20 = vmul.f32 1.442695, %v715_v19 }
 0x5a5   :  { %2366 = vpow2.f32 %v716_v20 }
 0x5b2   :  { %v2367_v21 = vpop.eup %2366 }
 0x5b3   :  { %v718_v23 = vsel %vm346_vm9, %v2367_v21, 0.0 }
 0x5b4   :  { %719 = vadd.xlane.f32.xlu0 %v718_v23 }
 0x5ca   :  { %822 = vrot.lane.b32.xlu0 %v2659_v53, %s2518_s29 }
 0x5ce   :  { %820 = vrot.lane.b32.xlu0 %v2667_v58, %s2518_s29  ;;  %v154_v58 = vld [vmem:[#allocation5 + $0x8] sm:$0xf] }
 0x5cf   :  { %v2755_v31 = vsel %vm409_vm10, %v154_v58, 0 }
 0x5d0   :  { %2214 = vmatpush3.bf16.msra.mxu1 %v2755_v31 }
 0x5d1   :  { %2225 = vmatprep.subr.bf16.mxu1 %v2514_v0 }
 0x63d   :  { %v720_v25 = vpop.xlane.xlu0 %719 }
 0x63e   :  { %2368 = vrcp.f32 %v720_v25 }
 0x641   :  { %v823_v28 = vpop.permute.xlu0 %822 }
 0x642   :  { %v828_v30 = vsel %vm346_vm9, %v823_v28, 0 }
 0x645   :  { %v821_v53 = vpop.permute.xlu0 %820 }
 0x64b   :  { %v2369_v26 = vpop.eup %2368 }
 0x64c   :  { %v722_v27 = vmul.f32 %v2369_v26, %v2367_v21 }
 0x64e   :  { %v723_v29 = vpack.c.bf16 %v722_v27, %v722_v27 }
 0x650   :  { %2210 = vmatmul.mubr.msk.bf16.vlgmr.msra.gmra.mxu0 %vm346_vm9, %v723_v29 }
 0x651   :  { %2220 = vmatpush3.bf16.xpose.msra.mxu0 %v828_v30  ;;  %2221 = vmatprep.mubr.msk.bf16.mxu0 %vm2515_vm0, %v2514_v0 }
 0x652   :  { %2231 = vmatprep.subr.bf16.mxu0 %v2514_v0 }
 0x658   :  { %2222 = vmatmul.mubr.msk.bf16.vlgmr.msra.gmra.mxu0 %vm346_vm9, %v821_v53 }
 0x659   :  { %2233 = vmatprep.mubr.msk.bf16.mxu0 %vm2515_vm0, %v2514_v0  ;;  %2232 = vmatpush3.bf16.msra.mxu0 %v2783_v63 }
 0x65a   :  { %2243 = vmatprep.subr.bf16.mxu0 %v2514_v0 }
 0x710   :  { %v766_v32 = vpop.f32.mrf.mxu0 }
 0x711   :  { %v772_v33 = vpack.c.bf16 %v766_v32, %v766_v32 }
 0x712   :  { %v2211_v34 = vpop.f32.mrf.mxu0 }
 0x713   :  { %2216 = vmatmul.mubr.msk.bf16.vlgmr.msra.gmra.mxu1 %vm346_vm9, %v772_v33 }
 0x714   :  { %v769_v36 = vpop.f32.mrf.mxu0  ;;  %2227 = vmatprep.mubr.msk.bf16.mxu1 %vm2515_vm0, %v2514_v0 }
 0x716   :  { %v2212_v37 = vpop.f32.mrf.mxu0 }
 0x718   :  { %v864_v40 = vpop.f32.mrf.mxu0 }
 0x719   :  { %v870_v41 = vmul.f32 0.35355338, %v864_v40 }
 0x71a   :  { %v2223_v42 = vpop.f32.mrf.mxu0 }
 0x71b   :  { %v871_v43 = vsel %vm346_vm9, %v870_v41, -inf }
 0x71c   :  { %872 = vmax.xlane.f32.xlu0 %v871_v43  ;;  %v867_v44 = vpop.f32.mrf.mxu0 }
 0x71e   :  { %v2224_v45 = vpop.f32.mrf.mxu0 }
 0x7a5   :  { %v873_v47 = vpop.xlane.xlu0 %872 }
 0x7a6   :  { %v874_v49 = vsub.f32 %v870_v41, %v873_v47 }
 0x7a8   :  { %v875_v50 = vmul.f32 1.442695, %v874_v49 }
 0x7aa   :  { %2370 = vpow2.f32 %v875_v50 }
 0x7b7   :  { %v2371_v51 = vpop.eup %2370 }
 0x7b8   :  { %v877_v52 = vsel %vm346_vm9, %v2371_v51, 0.0 }
 0x7b9   :  { %878 = vadd.xlane.f32.xlu1 %v877_v52 }
 0x7ca   :  { %883 = vrot.lane.b32.xlu1 %v2689_v22, %s2518_s29 }
 0x7ce   :  { %1092 = vrot.lane.b32.xlu1 %v2768_v54, %s2516_s2 }
 0x7d2   :  { %1089 = vrot.lane.b32.xlu1 %v2774_v56, %s2516_s2 }
 0x7d3   :  { %v813_v59 = vpop.f32.mrf.mxu1 }
 0x7d4   :  { %v2780_v60 = vadd.f32 %v813_v59, %v656_v57 }
 0x7d5   :  { %v2217_v22 = vpop.f32.mrf.mxu1 }
 0x7d7   :  { %v816_v61 = vpop.f32.mrf.mxu1 }
 0x7d9   :  { %v2218_v55 = vpop.f32.mrf.mxu1 }
 0x842   :  { %v879_v46 = vpop.xlane.xlu1 %878 }
 0x843   :  { %2372 = vrcp.f32 %v879_v46 }
 0x846   :  { %v884_v1 = vpop.permute.xlu1 %883 }
 0x847   :  { %v889_v2 = vsel %vm409_vm10, %v884_v1, 0 }
 0x848   :  { %2226 = vmatpush3.bf16.msra.mxu1 %v889_v2 }
 0x849   :  { %2237 = vmatprep.subr.bf16.mxu1 %v2514_v0 }
 0x84a   :  { %v1093_v7 = vpop.permute.xlu1 %1092 }
 0x84b   :  { %v1098_v8 = vsel %vm346_vm9, %v1093_v7, 0 }
 0x84e   :  { %v1090_v9 = vpop.permute.xlu1 %1089 }
 0x850   :  { %v2373_v3 = vpop.eup %2372 }
 0x851   :  { %v881_v4 = vmul.f32 %v2373_v3, %v2371_v51 }
 0x853   :  { %v882_v5 = vpack.c.bf16 %v881_v4, %v881_v4 }
 0x855   :  { %2228 = vmatmul.mubr.msk.bf16.vlgmr.msra.gmra.mxu1 %vm346_vm9, %v882_v5 }
 0x856   :  { %2238 = vmatpush3.bf16.xpose.msra.mxu1 %v986_v6  ;;  %2239 = vmatprep.mubr.msk.bf16.mxu1 %vm2515_vm0, %v2514_v0 }
 0x857   :  { %2249 = vmatprep.subr.bf16.mxu1 %v2514_v0 }
 0x85d   :  { %2240 = vmatmul.mubr.msk.bf16.vlgmr.msra.gmra.mxu1 %vm346_vm9, %v2774_v56 }
 0x85e   :  { %2250 = vmatpush3.bf16.xpose.msra.mxu1 %v1098_v8  ;;  %2251 = vmatprep.mubr.msk.bf16.mxu1 %vm2515_vm0, %v2514_v0 }
 0x85f   :  { %2261 = vmatprep.subr.bf16.mxu1 %v2514_v0 }
 0x865   :  { %2252 = vmatmul.mubr.msk.bf16.vlgmr.msra.gmra.mxu1 %vm346_vm9, %v1090_v9 }
 0x866   :  { %2262 = vmatpush3.bf16.msra.mxu1 %v2709_v39  ;;  %2263 = vmatprep.mubr.msk.bf16.mxu1 %vm2515_vm0, %v2514_v0 }
 0x867   :  { %2273 = vmatprep.subr.bf16.mxu1 %v2514_v0 }
 0x915   :  { %v925_v11 = vpop.f32.mrf.mxu1 }
 0x916   :  { %v931_v12 = vpack.c.bf16 %v925_v11, %v925_v11 }
 0x917   :  { %v2229_v13 = vpop.f32.mrf.mxu1 }
 0x918   :  { %2234 = vmatmul.mubr.msk.bf16.vlgmr.msra.gmra.mxu0 %vm346_vm9, %v931_v12 }
 0x919   :  { %2244 = vmatpush3.bf16.msra.mxu0 %v1045_v14  ;;  %v928_v15 = vpop.f32.mrf.mxu1  ;;  %2245 = vmatprep.mubr.msk.bf16.mxu0 %vm2515_vm0, %v2514_v0 }
 0x91a   :  { %2255 = vmatprep.subr.bf16.mxu0 %v2514_v0 }
 0x91b   :  { %v2230_v39 = vpop.f32.mrf.mxu1 }
 0x91d   :  { %v1022_v16 = vpop.f32.mrf.mxu1 }
 0x91e   :  { %v1028_v17 = vmul.f32 0.35355338, %v1022_v16 }
 0x91f   :  { %v2241_v24 = vpop.f32.mrf.mxu1 }
 0x920   :  { %v1029_v18 = vsel %vm346_vm9, %v1028_v17, -inf }
 0x921   :  { %1030 = vmax.xlane.f32.xlu1 %v1029_v18  ;;  %v1025_v19 = vpop.f32.mrf.mxu1 }
 0x923   :  { %v2242_v20 = vpop.f32.mrf.mxu1 }
 0x925   :  { %v1134_v21 = vpop.f32.mrf.mxu1 }
 0x926   :  { %v1140_v23 = vmul.f32 0.35355338, %v1134_v21 }
 0x927   :  { %v2253_v25 = vpop.f32.mrf.mxu1 }
 0x928   :  { %v1141_v26 = vsel %vm346_vm9, %v1140_v23, -inf }
 0x929   :  { %1142 = vmax.xlane.f32.xlu0 %v1141_v26  ;;  %v1137_v27 = vpop.f32.mrf.mxu1 }
 0x92b   :  { %v2254_v28 = vpop.f32.mrf.mxu1 }
 0x932   :  { %1289 = vrot.lane.b32.xlu1 %v2774_v56, %s2517_s28 }
 0x9aa   :  { %v1031_v29 = vpop.xlane.xlu1 %1030 }
 0x9ab   :  { %v1032_v30 = vsub.f32 %v1028_v17, %v1031_v29 }
 0x9ad   :  { %v1033_v53 = vmul.f32 1.442695, %v1032_v30 }
 0x9ae   :  { %v1290_v9 = vpop.permute.xlu1 %1289 }
 0x9af   :  { %2374 = vpow2.f32 %v1033_v53 }
 0x9b2   :  { %v1143_v58 = vpop.xlane.xlu0 %1142 }
 0x9b3   :  { %v1144_v32 = vsub.f32 %v1140_v23, %v1143_v58 }
 0x9b5   :  { %v1145_v33 = vmul.f32 1.442695, %v1144_v32 }
 0x9b7   :  { %2376 = vpow2.f32 %v1145_v33 }
 0x9bc   :  { %v2375_v34 = vpop.eup %2374 }
 0x9bd   :  { %v1035_v36 = vsel %vm346_vm9, %v2375_v34, 0.0 }
 0x9be   :  { %1036 = vadd.xlane.f32.xlu0 %v1035_v36 }
 0x9c4   :  { %v2377_v37 = vpop.eup %2376 }
 0x9c5   :  { %v1147_v40 = vsel %vm346_vm9, %v2377_v37, 0.0 }
 0x9c6   :  { %1148 = vadd.xlane.f32.xlu0 %v1147_v40 }
 0x9d8   :  { %v972_v41 = vpop.f32.mrf.mxu0 }
 0x9d9   :  { %v2823_v42 = vadd.f32 %v972_v41, %v2780_v60 }
 0x9da   :  { %v2235_v43 = vpop.f32.mrf.mxu0 }
 0x9dc   :  { %v975_v44 = vpop.f32.mrf.mxu0  ;;  %1154 = vrot.lane.b32.xlu0 %v2808_v10, %s2516_s2 }
 0x9de   :  { %v2236_v45 = vpop.f32.mrf.mxu0 }
 0x9e0   :  { %1291 = vrot.lane.b32.xlu0 %v2768_v54, %s2517_s28 }
 0xa47   :  { %v1037_v47 = vpop.xlane.xlu0 %1036 }
 0xa48   :  { %2378 = vrcp.f32 %v1037_v47 }
 0xa4f   :  { %v1149_v49 = vpop.xlane.xlu0 %1148 }
 0xa50   :  { %2380 = vrcp.f32 %v1149_v49 }
 0xa53   :  { %v1155_v52 = vpop.permute.xlu0 %1154 }
 0xa54   :  { %v1160_v59 = vsel %vm409_vm10, %v1155_v52, 0 }
 0xa55   :  { %v2379_v50 = vpop.eup %2378 }
 0xa56   :  { %v1039_v51 = vmul.f32 %v2379_v50, %v2375_v34 }
 0xa57   :  { %v1292_v3 = vpop.permute.xlu0 %1291 }
 0xa58   :  { %v1040_v57 = vpack.c.bf16 %v1039_v51, %v1039_v51 }
 0xa5a   :  { %2246 = vmatmul.mubr.msk.bf16.vlgmr.msra.gmra.mxu0 %vm346_vm9, %v1040_v57 }
 0xa5b   :  { %2256 = vmatpush3.bf16.msra.mxu0 %v1160_v59  ;;  %2257 = vmatprep.mubr.msk.bf16.mxu0 %vm2515_vm0, %v2514_v0 }
 0xa5c   :  { %2267 = vmatprep.subr.bf16.mxu0 %v2514_v0 }
 0xa5d   :  { %v2381_v60 = vpop.eup %2380 }
 0xa5e   :  { %v1151_v22 = vmul.f32 %v2381_v60, %v2377_v37 }
 0xa60   :  { %v1152_v61 = vpack.c.bf16 %v1151_v22, %v1151_v22 }
 0xa62   :  { %2258 = vmatmul.mubr.msk.bf16.vlgmr.msra.gmra.mxu0 %vm346_vm9, %v1152_v61  ;;  %v2061_v61 = vld [vmem:[#allocation8 + $0x3] ss:$0 sm:$0xff] }
 0xa63   :  { %2268 = vmatpush3.bf16.msra.mxu0 %v2716_v48  ;;  %2269 = vmatprep.mubr.msk.bf16.mxu0 %vm2515_vm0, %v2514_v0  ;;  %v1297_v48 = vsel %vm346_vm9, %v1292_v3, 0 }
 0xa64   :  { %2279 = vmatprep.subr.bf16.mxu0 %v2514_v0 }
 0xb1a   :  { %v1081_v55 = vpop.f32.mrf.mxu0 }
 0xb1b   :  { %v1087_v62 = vpack.c.bf16 %v1081_v55, %v1081_v55  ;;  %v1605_v55 = vadd.f32 %v2061_v61, %v2823_v42 }
 0xb1c   :  { %v2247_v46 = vpop.f32.mrf.mxu0 }
 0xb1d   :  { %2270 = vmatmul.mubr.msk.bf16.vlgmr.msra.gmra.mxu0 %vm346_vm9, %v1087_v62 }
 0xb1e   :  { %v1084_v1 = vpop.f32.mrf.mxu0  ;;  %2281 = vmatprep.mubr.msk.bf16.mxu0 %vm2515_vm0, %v2514_v0 }
 0xb1f   :  { %v1607_v1 = vadd.f32 %v1605_v55, %v2634_v35 }
 0xb20   :  { %v2248_v2 = vpop.f32.mrf.mxu0 }
 0xb22   :  { %v1196_v4 = vpop.f32.mrf.mxu0 }
 0xb23   :  { %v1202_v5 = vpack.c.bf16 %v1196_v4, %v1196_v4 }
 0xb24   :  { %v2259_v6 = vpop.f32.mrf.mxu0 }
 0xb25   :  { %2264 = vmatmul.mubr.msk.bf16.vlgmr.msra.gmra.mxu1 %vm346_vm9, %v1202_v5 }
 0xb26   :  { %2274 = vmatpush3.bf16.xpose.msra.mxu1 %v1297_v48  ;;  %v1199_v7 = vpop.f32.mrf.mxu0  ;;  %2275 = vmatprep.mubr.msk.bf16.mxu1 %vm2515_vm0, %v2514_v0 }
 0xb27   :  { %2285 = vmatprep.subr.bf16.mxu1 %v2514_v0 }
 0xb28   :  { %v2260_v8 = vpop.f32.mrf.mxu0 }
 0xb2d   :  { %2276 = vmatmul.mubr.msk.bf16.vlgmr.msra.gmra.mxu1 %vm346_vm9, %v1290_v9 }
 0xb2e   :  { %2286 = vmatpush3.bf16.msra.mxu1 %v2755_v31  ;;  %2287 = vmatprep.mubr.msk.bf16.mxu1 %vm2515_vm0, %v2514_v0 }
 0xb2f   :  { %2297 = vmatprep.subr.bf16.mxu1 %v2514_v0 }
 0xbdd   :  { %v1283_v11 = vpop.f32.mrf.mxu0 }
 0xbdf   :  { %v2271_v12 = vpop.f32.mrf.mxu0 }
 0xbe1   :  { %v1286_v13 = vpop.f32.mrf.mxu0 }
 0xbe3   :  { %v2272_v14 = vpop.f32.mrf.mxu0 }
 0xbe5   :  { %v1240_v15 = vpop.f32.mrf.mxu1 }
 0xbe6   :  { %v2852_v39 = vadd.f32 %v1283_v11, %v1240_v15 }
 0xbe7   :  { %v2265_v16 = vpop.f32.mrf.mxu1 }
 0xbe9   :  { %v1243_v17 = vpop.f32.mrf.mxu1 }
 0xbeb   :  { %v2266_v24 = vpop.f32.mrf.mxu1 }
 0xbed   :  { %v1333_v18 = vpop.f32.mrf.mxu1 }
 0xbee   :  { %v1339_v19 = vmul.f32 0.35355338, %v1333_v18 }
 0xbef   :  { %v2277_v20 = vpop.f32.mrf.mxu1 }
 0xbf0   :  { %v1340_v31 = vsel %vm346_vm9, %v1339_v19, -inf }
 0xbf1   :  { %1341 = vmax.xlane.f32.xlu0 %v1340_v31  ;;  %v1336_v21 = vpop.f32.mrf.mxu1 }
 0xbf3   :  { %v2278_v23 = vpop.f32.mrf.mxu1 }
 0xc07   :  { %1352 = vrot.lane.b32.xlu0 %v2808_v10, %s2517_s28 }
 0xc0b   :  { %1445 = vrot.lane.b32.xlu0 %v2774_v56, %s2518_s29 }
 0xc7a   :  { %v1342_v25 = vpop.xlane.xlu0 %1341 }
 0xc7b   :  { %v1343_v26 = vsub.f32 %v1339_v19, %v1342_v25 }
 0xc7d   :  { %v1344_v27 = vmul.f32 1.442695, %v1343_v26 }
 0xc7e   :  { %v1353_v28 = vpop.permute.xlu0 %1352 }
 0xc7f   :  { %2382 = vpow2.f32 %v1344_v27  ;;  %v1358_v29 = vsel %vm409_vm10, %v1353_v28, 0 }
 0xc80   :  { %2280 = vmatpush3.bf16.msra.mxu0 %v1358_v29 }
 0xc81   :  { %2291 = vmatprep.subr.bf16.mxu0 %v2514_v0 }
 0xc82   :  { %v1446_v37 = vpop.permute.xlu0 %1445 }
 0xc8c   :  { %v2383_v30 = vpop.eup %2382 }
 0xc8d   :  { %v1346_v53 = vsel %vm346_vm9, %v2383_v30, 0.0 }
 0xc8e   :  { %1347 = vadd.xlane.f32.xlu1 %v1346_v53  ;;  %v2352_v53 = vld [vmem:[#allocation7 + $0x8] sm:$0xff]  }
 0xc9f   :  { %1447 = vrot.lane.b32.xlu1 %v2768_v54, %s2518_s29 }
 0xd17   :  { %v1348_v58 = vpop.xlane.xlu1 %1347 }
 0xd18   :  { %2384 = vrcp.f32 %v1348_v58  ;;  %v2353_v58 = vld [vmem:[#allocation7] sm:$0xff]  }
 0xd1b   :  { %v1448_v33 = vpop.permute.xlu1 %1447 }
 0xd1c   :  { %v1453_v36 = vsel %vm346_vm9, %v1448_v33, 0 }
 0xd25   :  { %v2385_v56 = vpop.eup %2384 }
 0xd26   :  { %v1350_v32 = vmul.f32 %v2385_v56, %v2383_v30 }
 0xd28   :  { %v1351_v34 = vpack.c.bf16 %v1350_v32, %v1350_v32 }
 0xd2a   :  { %2282 = vmatmul.mubr.msk.bf16.vlgmr.msra.gmra.mxu0 %vm346_vm9, %v1351_v34 }
 0xd2b   :  { %2292 = vmatpush3.bf16.xpose.msra.mxu0 %v1453_v36  ;;  %2293 = vmatprep.mubr.msk.bf16.mxu0 %vm2515_vm0, %v2514_v0 }
 0xd2c   :  { %2303 = vmatprep.subr.bf16.mxu0 %v2514_v0 }
 0xd32   :  { %2294 = vmatmul.mubr.msk.bf16.vlgmr.msra.gmra.mxu0 %vm346_vm9, %v1446_v37 }
 0xd33   :  { %2304 = vmatpush3.bf16.msra.mxu0 %v2783_v63  ;;  %2305 = vmatprep.mubr.msk.bf16.mxu0 %vm2515_vm0, %v2514_v0 }
 0xd34   :  { %2317 = vmatprep.subr.bf16.mxu0 %v2514_v0 }
 0xdea   :  { %v1394_v54 = vpop.f32.mrf.mxu0 }
 0xdeb   :  { %v1400_v40 = vpack.c.bf16 %v1394_v54, %v1394_v54 }
 0xdec   :  { %v2283_v41 = vpop.f32.mrf.mxu0 }
 0xded   :  { %2288 = vmatmul.mubr.msk.bf16.vlgmr.msra.gmra.mxu1 %vm346_vm9, %v1400_v40  ;;  %v2062_v41 = vld [vmem:[#allocation8 + $0x4] ss:$0 sm:$0xff] }
 0xdee   :  { %v1397_v43 = vpop.f32.mrf.mxu0  ;;  %2299 = vmatprep.mubr.msk.bf16.mxu1 %vm2515_vm0, %v2514_v0 }
 0xdf0   :  { %v2284_v44 = vpop.f32.mrf.mxu0 }
 0xdf2   :  { %v1489_v45 = vpop.f32.mrf.mxu0 }
 0xdf3   :  { %v1495_v47 = vmul.f32 0.35355338, %v1489_v45 }
 0xdf4   :  { %v2295_v49 = vpop.f32.mrf.mxu0 }
 0xdf5   :  { %v1496_v63 = vsel %vm346_vm9, %v1495_v47, -inf }
 0xdf6   :  { %1497 = vmax.xlane.f32.xlu0 %v1496_v63  ;;  %v1492_v50 = vpop.f32.mrf.mxu0 }
 0xdf8   :  { %v2296_v51 = vpop.f32.mrf.mxu0 }
 0xe0c   :  { %1508 = vrot.lane.b32.xlu0 %v2808_v10, %s2518_s29  ;;  %v1609_v10 = vsel %vm176_vm8, %v1607_v1, 0.0 }
 0xe7f   :  { %v1498_v52 = vpop.xlane.xlu0 %1497 }
 0xe80   :  { %v1499_v57 = vsub.f32 %v1495_v47, %v1498_v52  ;;  %v2063_v47 = vld [vmem:[#allocation8 + $0x5] ss:$0 sm:$0xff] }
 0xe81   :  { %v2355_v52 = vld [vmem:[%s2946_s6 + $0x10] sm:$0xff]  }
 0xe82   :  { %v1500_v59 = vmul.f32 1.442695, %v1499_v57  ;;  %v2356_v57 = vld [vmem:[%s2946_s6 + $0x8] sm:$0xff]  }
 0xe83   :  { %v1509_v60 = vpop.permute.xlu0 %1508 }
 0xe84   :  { %2386 = vpow2.f32 %v1500_v59  ;;  %v1514_v22 = vsel %vm409_vm10, %v1509_v60, 0  ;;  %v2357_v59 = vld [vmem:[%s2946_s6] sm:$0xff]  }
 0xe85   :  { %2298 = vmatpush3.bf16.msra.mxu1 %v1514_v22  ;;  %v2064_v60 = vld [vmem:[%s2948_s8] ss:$0 sm:$0xff] }
 0xe86   :  { %2309 = vmatprep.subr.bf16.mxu1 %v2514_v0 }
 0xe91   :  { %v2387_v62 = vpop.eup %2386 }
 0xe92   :  { %v1502_v46 = vsel %vm346_vm9, %v2387_v62, 0.0 }
 0xe93   :  { %1503 = vadd.xlane.f32.xlu1 %v1502_v46 }
 0xe97   :  { %1610 = vadd.xlane.f32.xlu1 %v1609_v10 }
 0xead   :  { %v1438_v2 = vpop.f32.mrf.mxu1 }
 0xeae   :  { %v1444_v3 = vadd.f32 %v1438_v2, %v2852_v39 }
 0xeaf   :  { %v2289_v4 = vpop.f32.mrf.mxu1 }
 0xeb0   :  { %v2068_v4 = vld [vmem:[#allocation8 + $0x6] ss:$0 sm:$0xff] }
 0xeb1   :  { %v1441_v5 = vpop.f32.mrf.mxu1 }
 0xeb3   :  { %v2290_v6 = vpop.f32.mrf.mxu1 }
 0xf1c   :  { %v1504_v48 = vpop.xlane.xlu1 %1503 }
 0xf1d   :  { %2388 = vrcp.f32 %v1504_v48 }
 0xf20   :  { %v1611_v7 = vpop.xlane.xlu1 %1610 }
 0xf21   :  { %v1616_v8 = vmul.f32 0.03125, %v1611_v7 }
 0xf23   :  { %v1618_v42 = vsub.f32 %v1607_v1, %v1616_v8 }
 0xf25   :  { %v1620_v9 = vmul.f32 %v1618_v42, %v1618_v42 }
 0xf27   :  { %v1622_v11 = vsel %vm176_vm8, %v1620_v9, 0.0 }
 0xf28   :  { %1623 = vadd.xlane.f32.xlu0 %v1622_v11 }
 0xf2a   :  { %v2389_v35 = vpop.eup %2388 }
 0xf2b   :  { %v1506_v12 = vmul.f32 %v2389_v35, %v2387_v62 }
 0xf2d   :  { %v1507_v13 = vpack.c.bf16 %v1506_v12, %v1506_v12 }
 0xf2f   :  { %2300 = vmatmul.mubr.msk.bf16.vlgmr.msra.gmra.mxu1 %vm346_vm9, %v1507_v13 }
 0xf30   :  { %2313 = vmatprep.mubr.msk.bf16.mxu1 %vm2515_vm0, %v2514_v0  ;;  %2310 = vmatpush3.bf16.msra.mxu1 %v2352_v53 }
 0xf31   :  { %2311 = vmatprep.subr.bf16.mxu1 %v2514_v0 }
 0xf34   :  { %2312 = vmatpush3.bf16.msra.mxu1 %v2353_v58 }
 0xfb1   :  { %v1624_v56 = vpop.xlane.xlu0 %1623 }
 0xfb2   :  { %v1628_v32 = vmul.f32 0.03125, %v1624_v56 }
 0xfb4   :  { %v1630_v33 = vadd.f32 1e-05, %v1628_v32  ;;  %v2075_v32 = vld [vmem:[#allocation8 + $0x8] ss:$0 sm:$0xff] }
 0xfb6   :  { %2390 = vrsqrt.f32 %v1630_v33 }
 0xfc3   :  { %v2391_v54 = vpop.eup %2390 }
 0xfc4   :  { %v1634_v40 = vmul.f32 %v2391_v54, %v1618_v42 }
 0xfc6   :  { %v1640_v45 = vmul.f32 %v2062_v41, %v1634_v40 }
 0xfc8   :  { %v1646_v63 = vadd.f32 %v2063_v47, %v1640_v45 }
 0xfef   :  { %v1550_v14 = vpop.f32.mrf.mxu1 }
 0xff0   :  { %v1556_v15 = vpack.c.bf16 %v1550_v14, %v1550_v14 }
 0xff1   :  { %v2301_v39 = vpop.f32.mrf.mxu1 }
 0xff2   :  { %2306 = vmatmul.mubr.msk.bf16.vlgmr.msra.gmra.mxu0 %vm346_vm9, %v1556_v15 }
 0xff3   :  { %v1553_v16 = vpop.f32.mrf.mxu1  ;;  %2325 = vmatprep.mubr.msk.bf16.mxu0 %vm2515_vm0, %v2514_v0 }
 0xff5   :  { %v2302_v17 = vpop.f32.mrf.mxu1 }
0x10b2   :  { %v1594_v24 = vpop.f32.mrf.mxu0 }
0x10b3   :  { %v1600_v18 = vadd.f32 %v1594_v24, %v1444_v3 }
0x10b4   :  { %v2307_v19 = vpop.f32.mrf.mxu0 }
0x10b5   :  { %v1606_v20 = vadd.f32 %v2061_v61, %v1600_v18 }
0x10b6   :  { %v1597_v31 = vpop.f32.mrf.mxu0 }
0x10b7   :  { %v1608_v21 = vadd.f32 %v1606_v20, %v2639_v38  ;;  %v2354_v38 = vld [vmem:[%s2946_s6 + $0x18] sm:$0xff]   ;;  %s2520_s6 = smov [#allocation10]  }
0x10b8   :  { %v2308_v23 = vpop.f32.mrf.mxu0  ;;  %2318 = vmatpush3.bf16.msra.mxu0 %v2354_v38  ;;  %v2074_v38 = vld [vmem:[#allocation8 + $0x7] ss:$0 sm:$0xff]  ;;  %s2011_s8 = sshll.u32 %s2520_s6, 4  ;;  %s2012_s8 = int_to_ptr.vmem [resolvable:$true] %s2011_s8 }
0x10b9   :  { %v1612_v25 = vsel %vm176_vm8, %v1608_v21, 0.0  ;;  %2319 = vmatprep.subr.bf16.mxu0 %v2514_v0  ;;  %s2478_s17 = scalar_lea.vmem %s2012_s8, 256  ;;  %p2483_p7 = scmp.lt.s32.totalorder %s2012_s8, %s2012_s8 }
0x10ba   :  { %1613 = vadd.xlane.f32.xlu1 %v1612_v25  ;;  %p2479_p6 = scmp.ne.s32.totalorder %s2012_s8, %s2478_s17  ;;  %p2484_p8 = scmp.lt.s32.totalorder %s2478_s17, %s2478_s17 }
0x10bc   :  { %2320 = vmatpush3.bf16.msra.mxu0 %v2355_v52  ;;  %p2485_p9 = por %p2484_p8, %p2483_p7 }
0x10bd   :  { %2321 = vmatprep.subr.bf16.mxu0 %v2514_v0 }
0x10be   :  { %p2486_p10 = pnand %p2485_p9, %p2479_p6 }
0x10c0   :  { %2322 = vmatpush3.bf16.msra.mxu0 %v2356_v57 }
0x10c1   :  { %2323 = vmatprep.subr.bf16.mxu0 %v2514_v0 }
0x10c4   :  { %2324 = vmatpush3.bf16.msra.mxu0 %v2357_v59 }
0x1143   :  { %v1614_v26 = vpop.xlane.xlu1 %1613 }
0x1144   :  { %v1617_v27 = vmul.f32 0.03125, %v1614_v26 }
0x1146   :  { %v1619_v28 = vsub.f32 %v1608_v21, %v1617_v27  ;;  %v2519_v27 = vmov 1966171168  }
0x1148   :  { %v1621_v29 = vmul.f32 %v1619_v28, %v1619_v28 }
0x114a   :  { %v1625_v30 = vsel %vm176_vm8, %v1621_v29, 0.0  ;;  %v1845_v29 = vlaneseq }
0x114b   :  { %1626 = vadd.xlane.f32.xlu1 %v1625_v30 }
0x114c   :  { %v1846_v53 = vshrl.u32 %v1845_v29, 7 }
0x11d4   :  { %v1627_v34 = vpop.xlane.xlu1 %1626 }
0x11d5   :  { %v1629_v36 = vmul.f32 0.03125, %v1627_v34 }
0x11d7   :  { %v1631_v37 = vadd.f32 1e-05, %v1629_v36 }
0x11d9   :  { %2392 = vrsqrt.f32 %v1631_v37 }
0x11e6   :  { %v2393_v43 = vpop.eup %2392 }
0x11e7   :  { %v1635_v44 = vmul.f32 %v2393_v43, %v1619_v28  ;;  %v1843_v28 = vunpack.c.l.s4 %v2519_v27 }
0x11e9   :  { %v1641_v49 = vmul.f32 %v2062_v41, %v1635_v44  ;;  %v1844_v30 = vunpack.c.0.s8 %v1843_v28 }
0x11eb   :  { %v1647_v50 = vadd.f32 %v2063_v47, %v1641_v49  ;;  %v1847_v33 = vsub.s32 %v1844_v30, %v1846_v53 }
0x11ed   :  { %v1648_v51 = vpack.c.bf16 %v1647_v50, %v1646_v63 }
0x11ef   :  { %2314 = vmatmul.mubr.msk.bf16.vlgmr.msra.gmra.mxu1 %vm176_vm8, %v1648_v51 }
0x12af   :  { %v1709_v22 = vpop.f32.mrf.mxu1 }
0x12b0   :  { %v1710_v55 = vadd.f32 %v2064_v60, %v1709_v22 }
0x12b1   :  { %v2315_v61 = vpop.f32.mrf.mxu1 }
0x12b2   :  { %v1716_v10 = vmax.f32 %v1710_v55, 0.0 }
0x12b3   :  { %v1712_v62 = vpop.f32.mrf.mxu1 }
0x12b4   :  { %v1713_v46 = vadd.f32 %v2064_v60, %v1712_v62 }
0x12b5   :  { %v2316_v1 = vpop.f32.mrf.mxu1 }
0x12b6   :  { %v1717_v2 = vmax.f32 %v1713_v46, 0.0 }
0x12b8   :  { %v1718_v3 = vpack.c.bf16 %v1717_v2, %v1716_v10 }
0x12ba   :  { %2326 = vmatmul.mubr.msk.bf16.vlgmr.msra.gmra.mxu0 %vm1755_vm11, %v1718_v3 }
0x137a   :  { %v1793_v0 = vpop.f32.mrf.mxu0 }
0x137b   :  { %v1794_v48 = vadd.f32 %v2068_v4, %v1793_v0 }
0x137c   :  { %v2327_v5 = vpop.f32.mrf.mxu0 }
0x137d   :  { %v1800_v11 = vadd.f32 %v1794_v48, %v1646_v63  ;;  %v1950_v63 = vsub.s32 0, %v1846_v53 }
0x137e   :  { %v1796_v6 = vpop.f32.mrf.mxu0 }
0x137f   :  { %v1797_v7 = vadd.f32 %v2068_v4, %v1796_v6  ;;  %v1802_v35 = vsel %vm176_vm8, %v1800_v11, 0.0 }
0x1380   :  { %v2328_v8 = vpop.f32.mrf.mxu0 }
0x1381   :  { %v1801_v42 = vadd.f32 %v1797_v7, %v1647_v50 }
0x1383   :  { %v1805_v9 = vsel %vm176_vm8, %v1801_v42, 0.0 }
0x1384   :  { %1806 = vadd.xlane.f32.xlu1 %v1805_v9 }
0x1388   :  { %1803 = vadd.xlane.f32.xlu1 %v1802_v35 }
0x140d   :  { %v1807_v12 = vpop.xlane.xlu1 %1806 }
0x140e   :  { %v1809_v13 = vmul.f32 0.03125, %v1807_v12 }
0x1410   :  { %v1811_v14 = vsub.f32 %v1801_v42, %v1809_v13 }
0x1411   :  { %v1804_v15 = vpop.xlane.xlu1 %1803 }
0x1412   :  { %v1808_v39 = vmul.f32 0.03125, %v1804_v15  ;;  %v1813_v16 = vmul.f32 %v1811_v14, %v1811_v14 }
0x1414   :  { %v1810_v17 = vsub.f32 %v1800_v11, %v1808_v39  ;;  %v1817_v24 = vsel %vm176_vm8, %v1813_v16, 0.0 }
0x1415   :  { %1818 = vadd.xlane.f32.xlu1 %v1817_v24 }
0x1416   :  { %v1812_v18 = vmul.f32 %v1810_v17, %v1810_v17 }
0x1418   :  { %v1814_v19 = vsel %vm176_vm8, %v1812_v18, 0.0 }
0x1419   :  { %1815 = vadd.xlane.f32.xlu1 %v1814_v19 }
0x149e   :  { %v1819_v20 = vpop.xlane.xlu1 %1818 }
0x149f   :  { %v1821_v31 = vmul.f32 0.03125, %v1819_v20 }
0x14a1   :  { %v1823_v21 = vadd.f32 1e-05, %v1821_v31 }
0x14a2   :  { %v1816_v23 = vpop.xlane.xlu1 %1815 }
0x14a3   :  { %2394 = vrsqrt.f32 %v1823_v21  ;;  %v1820_v25 = vmul.f32 0.03125, %v1816_v23 }
0x14a5   :  { %v1822_v26 = vadd.f32 1e-05, %v1820_v25 }
0x14a7   :  { %2396 = vrsqrt.f32 %v1822_v26 }
0x14b0   :  { %v2395_v58 = vpop.eup %2394 }
0x14b1   :  { %v1827_v56 = vmul.f32 %v2395_v58, %v1811_v14 }
0x14b3   :  { %v1833_v34 = vmul.f32 %v2074_v38, %v1827_v56 }
0x14b4   :  { %v2397_v36 = vpop.eup %2396 }
0x14b5   :  { %v1839_v37 = vadd.f32 %v2075_v32, %v1833_v34  ;;  %v1826_v54 = vmul.f32 %v2397_v36, %v1810_v17 }
0x14b7   :  { %v1899_v40 = vcombine.high %v1839_v37, %v1839_v37  ;;  %v1906_v41 = vrot.slane %v1839_v37, %v1847_v33  ;;  %v1832_v43 = vmul.f32 %v2074_v38, %v1826_v54 }
0x14b9   :  { %v1913_v44 = vrot.slane %v1899_v40, %v1847_v33  ;;  %v1914_v45 = vcombine.high %v1906_v41, %v1906_v41  ;;  %v1922_v47 = vrot.slane %v1906_v41, %v1847_v33  ;;  %v1838_v49 = vadd.f32 %v2075_v32, %v1832_v43 }
0x14bb   :  { %v1915_v50 = vcombine.high %v1913_v44, %v1913_v44  ;;  %v1929_v51 = vrot.slane %v1913_v44, %v1847_v33  ;;  %v1936_v52 = vrot.slane %v1914_v45, %v1847_v33  ;;  %v1944_v57 = vcombine.high %v1922_v47, %v1922_v47 }
0x14bc   :  { %v1841_v59 = vcombine.high %v1838_v49, %v1838_v49  ;;  %v1848_v60 = vrot.slane %v1838_v49, %v1847_v33  ;;  %v1951_v10 = vrot.slane %v1922_v47, %v1950_v63 }
0x14bd   :  { %v1943_v22 = vrot.slane %v1915_v50, %v1847_v33  ;;  %v1945_v61 = vcombine.high %v1929_v51, %v1929_v51  ;;  %v1946_v55 = vcombine.high %v1936_v52, %v1936_v52  ;;  %v1955_v2 = vrot.slane %v1936_v52, %v1950_v63 }
0x14be   :  { %v1855_v62 = vrot.slane %v1841_v59, %v1847_v33  ;;  %v1856_v46 = vcombine.high %v1848_v60, %v1848_v60  ;;  %v1959_v3 = vrot.slane %v1944_v57, %v1950_v63  ;;  %v1864_v4 = vrot.slane %v1848_v60, %v1847_v33 }
0x14bf   :  { %v1947_v1 = vcombine.high %v1943_v22, %v1943_v22  ;;  %v1963_v48 = vrot.slane %v1946_v55, %v1950_v63  ;;  %v1967_v7 = vrot.slane %v1929_v51, %v1950_v63  ;;  %v1971_v8 = vrot.slane %v1943_v22, %v1950_v63 }
0x14c0   :  { %v1857_v0 = vcombine.high %v1855_v62, %v1855_v62  ;;  %v1871_v5 = vrot.slane %v1855_v62, %v1847_v33  ;;  %v1878_v6 = vrot.slane %v1856_v46, %v1847_v33  ;;  %v1975_v42 = vrot.slane %v1945_v61, %v1950_v63 }
0x14c1   :  { %v1886_v11 = vcombine.high %v1864_v4, %v1864_v4  ;;  %v1979_v13 = vrot.slane %v1947_v1, %v1950_v63  ;;  %v1989_v14 = vsel %vm1988_vm12, %v1864_v4, %v1951_v10 }
0x14c2   :  { %v1885_v9 = vrot.slane %v1857_v0, %v1847_v33  ;;  %v1887_v35 = vcombine.high %v1871_v5, %v1871_v5  ;;  %v1888_v12 = vcombine.high %v1878_v6, %v1878_v6  ;;  %v1990_v15 = vsel %vm1988_vm12, %v1878_v6, %v1955_v2  ;;  %1998 = vst.msk [vmem:[#allocation10] sm:$0x3] %vm1997_vm13, %v1989_v14 }
0x14c3   :  { %v1993_v39 = vsel %vm1988_vm12, %v1871_v5, %v1967_v7  ;;  %v1991_v17 = vsel %vm1988_vm12, %v1886_v11, %v1959_v3  ;;  %1999 = vst.msk [vmem:[#allocation10 + $0x2] sm:$0x3] %vm1997_vm13, %v1990_v15 }
0x14c4   :  { %v1889_v16 = vcombine.high %v1885_v9, %v1885_v9  ;;  %v1992_v24 = vsel %vm1988_vm12, %v1888_v12, %v1963_v48  ;;  %v1994_v18 = vsel %vm1988_vm12, %v1885_v9, %v1971_v8  ;;  %2002 = vst.msk [vmem:[#allocation10 + $0x8] sm:$0x3] %vm1997_vm13, %v1993_v39  ;;  %v1995_v19 = vsel %vm1988_vm12, %v1887_v35, %v1975_v42 }
0x14c5   :  { %2000 = vst.msk [vmem:[#allocation10 + $0x4] sm:$0x3] %vm1997_vm13, %v1991_v17  ;;  %2001 = vst.msk [vmem:[#allocation10 + $0x6] sm:$0x3] %vm1997_vm13, %v1992_v24 }
0x14c6   :  { %2003 = vst.msk [vmem:[#allocation10 + $0xa] sm:$0x3] %vm1997_vm13, %v1994_v18  ;;  %v1996_v20 = vsel %vm1988_vm12, %v1889_v16, %v1979_v13  ;;  %2004 = vst.msk [vmem:[#allocation10 + $0xc] sm:$0x3] %vm1997_vm13, %v1995_v19 }
0x14c7   :  { %2005 = vst.msk [vmem:[#allocation10 + $0xe] sm:$0x3] %vm1997_vm13, %v1996_v20 }
0x14c8   :  { %2489 = shalt.err (!%p2486_p10)
}
0x14c9   :  { %s2521_s18 = smov 32   ;;  %s2522_s19 = smov 2  }
0x14ca   :  { %2017 = dma.vmem_to_hbm [thread:$0]  %s2012_s8, 256, %s2949_s9, [#allocation4], %s2521_s18, %s2521_s18, %s2522_s19  }
0x14cb   :  { %2504 = dma.done.wait [#allocation4], 256  }
0x14cc   :  { %2505 = vsyncadd [#allocation4], 4294967040 }
0x14cd   :  { %2021 = vsyncpa [#allocation3], 1 }
0x14ce   :  { %2022 = vsyncpa [#allocation6], 1 }
0x14cf   :  { %2023 = vsyncpa [#allocation9], 1 }
0x14d0   :  { %2024 = vsyncpa [#allocation4], 1 }

</bundles_post_ra>
